<compile_context>
chip_gen: v7x
topology: tpu7x:2x2x1
jax: 0.10.0
libtpu: 0.0.40
codegen_flags: <defaults>
</compile_context>

<pallas_src>
import numpy as np
import jax
import jax.numpy as jnp
from jax.experimental import pallas as pl
from jax.experimental.pallas import tpu as pltpu


def _msg_kernel(x_ref, u_ref, k_ref, b_ref, o_ref):
    bn, C, HW = x_ref.shape
    bias = b_ref[0]                                            # scalar (SMEM)

    # Short static unroll over the batch tile (bn <= 8).  Each iteration is a
    # fully independent (C, HW) slab -> only 2-D ops, no relayouts.
    for b in range(bn):
        x = x_ref[b].astype(jnp.float32)                       # (C, HW), f32

        # 1. multiscale avg-pool + nearest-upsample: one bf16 MXU matmul.
        t = jnp.dot(x.astype(jnp.bfloat16), u_ref[...],
                    preferred_element_type=jnp.float32)        # (C, 3*HW)
        u2 = t[:, 0 * HW:1 * HW]                               # lane-aligned
        u4 = t[:, 1 * HW:2 * HW]
        u8 = t[:, 2 * HW:3 * HW]

        # 2. ChannelPool over cat([up2, up4, up8, x], channels), f32 VPU + XLU.
        mx = jnp.maximum(jnp.maximum(u2, u4), jnp.maximum(u8, x))
        sm = (u2 + u4) + (u8 + x)
        max_hw = jnp.max(mx, axis=0, keepdims=True)            # (1, HW)
        mean_hw = jnp.sum(sm, axis=0, keepdims=True) * (1.0 / (4.0 * C))

        # 3. 7x7 conv + folded BatchNorm: one f32 MXU matmul (padding baked in).
        d = jnp.concatenate([max_hw, mean_hw], axis=-1)        # (1, 2*HW)
        y = jnp.dot(d, k_ref[...], preferred_element_type=jnp.float32) + bias

        # 4. sigmoid gate (EUP exp + approx reciprocal) + gating multiply.
        gate = pl.reciprocal(1.0 + jnp.exp(-y), approx=True)   # (1, HW)
        o_ref[b] = (x * gate).astype(o_ref.dtype)


def _block_avg_matrix(n, s):
    idx = np.arange(n)
    return ((idx[:, None] // s) == (idx[None, :] // s)).astype(np.float32) / float(s)


def _pool_upsample_kron(H, W, scales):
    # avg_pool(s, stride=s) + nearest upsample on the flattened (H*W,) vector
    # is the symmetric linear operator kron(Ah_s, Aw_s); stack scales in cols.
    mats = [np.kron(_block_avg_matrix(H, s), _block_avg_matrix(W, s)) for s in scales]
    return np.concatenate(mats, axis=1)                         # (HW, len(scales)*HW)


def _conv_matrix(w_c, H, W, ks=7):
    # (HW, HW) matrix K with out_flat = in_flat @ K implementing the 7x7
    # cross-correlation with zero padding P=(ks-1)//2 baked in.
    P = (ks - 1) // 2
    ry = np.arange(H)[:, None, None, None]   # input (row of K) coords
    rx = np.arange(W)[None, :, None, None]
    cy = np.arange(H)[None, None, :, None]   # output (col of K) coords
    cx = np.arange(W)[None, None, None, :]
    di = ry - cy + P
    dj = rx - cx + P
    valid = (di >= 0) & (di < ks) & (dj >= 0) & (dj < ks)
    taps = w_c[np.clip(di, 0, ks - 1), np.clip(dj, 0, ks - 1)]  # (H, W, H, W)
    k = jnp.where(jnp.asarray(valid), taps, 0.0)
    return k.reshape(H * W, H * W)


def _pick_batch_tile(N, C, HW, max_tile=8, vmem_budget=4 << 20):
    """Largest divisor of N (<= max_tile) whose x+out blocks stay tiny in VMEM."""
    bn = 1
    for d in range(1, min(N, max_tile) + 1):
        if N % d == 0 and 2 * d * C * HW * 4 <= vmem_budget:
            bn = d
    return bn


def multiscale_spatial_gate(x, conv_w, bn_gamma, bn_beta, bn_mean, bn_var, eps=1e-5):
    N, C, H, W = x.shape
    scales = (2, 4, 8)
    assert H % 8 == 0 and W % 8 == 0, "H, W must be divisible by 8 for exact pooling"
    HW = H * W
    bn_tile = _pick_batch_tile(N, C, HW)

    # Pooling operator (constant): exact in bf16 (entries are powers of two).
    u = jnp.asarray(_pool_upsample_kron(H, W, scales), dtype=jnp.bfloat16)   # (HW, 3HW)

    # Fold eval-mode BN (scale a, bias b) into the conv matrix / bias.
    a = (bn_gamma / jnp.sqrt(bn_var + eps)).astype(jnp.float32)
    b = (bn_beta - bn_mean * a).astype(jnp.float32)
    k_max = _conv_matrix(conv_w[0, 0].astype(jnp.float32), H, W)   # channel 0 = max
    k_mean = _conv_matrix(conv_w[0, 1].astype(jnp.float32), H, W)  # channel 1 = mean
    k_full = (jnp.concatenate([k_max, k_mean], axis=0) * a).astype(jnp.float32)  # (2HW, HW)
    bias = b.reshape(1)

    x_flat = x.reshape(N, C, HW)

    cost = pl.CostEstimate(
        flops=int(N * (2 * C * HW * 3 * HW + 2 * 2 * HW * HW + 12 * C * HW)),
        transcendentals=int(N * HW),
        bytes_accessed=int(2 * N * C * HW * 4 + HW * 3 * HW * 2 + 2 * HW * HW * 4),
    )

    kernel = pl.pallas_call(
        _msg_kernel,
        out_shape=jax.ShapeDtypeStruct((N, C, HW), x.dtype),
        grid=(N // bn_tile,),
        in_specs=[
            pl.BlockSpec((bn_tile, C, HW), lambda n: (n, 0, 0)),
            pl.BlockSpec((HW, 3 * HW), lambda n: (0, 0)),
            pl.BlockSpec((2 * HW, HW), lambda n: (0, 0)),
            pl.BlockSpec(memory_space=pltpu.MemorySpace.SMEM),
        ],
        out_specs=pl.BlockSpec((bn_tile, C, HW), lambda n: (n, 0, 0)),
        compiler_params=pltpu.CompilerParams(
            dimension_semantics=("parallel",),
            vmem_limit_bytes=32 * 1024 * 1024,
        ),
        cost_estimate=cost,
    )
    out = kernel(x_flat, u, k_full, bias)
    return out.reshape(N, C, H, W)


def _ref_forward(x, conv_w, bn_gamma, bn_beta, bn_mean, bn_var, eps=1e-5):
    """Pure-JAX f32 reference matching the PyTorch module (eval-mode BN)."""
    N, C, H, W = x.shape
    ups = []
    for s in (2, 4, 8):
        p = x.reshape(N, C, H // s, s, W // s, s).mean(axis=(3, 5))
        u = jnp.repeat(jnp.repeat(p, s, axis=2), s, axis=3)
        ups.append(u)
    comb = jnp.concatenate(ups + [x], axis=1)
    comp = jnp.concatenate(
        [comb.max(axis=1, keepdims=True), comb.mean(axis=1, keepdims=True)], axis=1)
    out = jax.lax.conv_general_dilated(
        comp.astype(jnp.float32), conv_w.astype(jnp.float32),
        window_strides=(1, 1), padding=[(3, 3), (3, 3)],
        dimension_numbers=("NCHW", "OIHW", "NCHW"))
    a = bn_gamma / jnp.sqrt(bn_var + eps)
    b = bn_beta - bn_mean * a
    out = out * a + b
    return x * jax.nn.sigmoid(out)


if __name__ == "__main__":
    key = jax.random.PRNGKey(0)
    k1, k2 = jax.random.split(key)
    N, C, H, W = 2, 4, 16, 16
    x = jax.random.normal(k1, (N, C, H, W), dtype=jnp.float32)
    # Conv2d(2, 1, kernel_size=7, padding=3, bias=False) weight.
    conv_w = jax.random.normal(k2, (1, 2, 7, 7), dtype=jnp.float32) * 0.1
    # BatchNorm2d(1) parameters / running stats (PyTorch defaults, eval mode).
    bn_gamma = jnp.ones((), jnp.float32)
    bn_beta = jnp.zeros((), jnp.float32)
    bn_mean = jnp.zeros((), jnp.float32)
    bn_var = jnp.ones((), jnp.float32)

    out = multiscale_spatial_gate(x, conv_w, bn_gamma, bn_beta, bn_mean, bn_var)
    out = jax.block_until_ready(out)

    ref = _ref_forward(x, conv_w, bn_gamma, bn_beta, bn_mean, bn_var)
    # Tolerance loosened vs. the pure-f32 reference: the pooling matmul runs
    # with bf16 operands (f32 accumulation) and the gate uses the EUP
    # approximate reciprocal.
    np.testing.assert_allclose(np.asarray(out), np.asarray(ref), atol=5e-2, rtol=5e-2)
    print("KERNEL_OK")
</pallas_src>

<mosaic_0001>
module attributes {stable_mosaic.version = 11 : i64} {
  func.func @_msg_kernel(%arg0: i32, %arg1: memref<2x4x256xf32, #tpu.memory_space<vmem>>, %arg2: memref<256x768xbf16, #tpu.memory_space<vmem>>, %arg3: memref<512x256xf32, #tpu.memory_space<vmem>>, %arg4: memref<1xf32, #tpu.memory_space<smem>>, %arg5: memref<2x4x256xf32, #tpu.memory_space<vmem>>) attributes {dimension_semantics = [#tpu.dimension_semantics<parallel>], iteration_bounds = array<i64: 1>, scalar_prefetch = 0 : i64, scratch_operands = 0 : i64, tpu.core_type = #tpu.core_type<tc>, window_params = [{transform_indices = @transform_0, window_bounds = array<i64: 2, 4, 256>}, {pipeline_mode = #tpu.pipeline_mode<synchronous>, transform_indices = @transform_1, window_bounds = array<i64: 256, 768>}, {pipeline_mode = #tpu.pipeline_mode<synchronous>, transform_indices = @transform_2, window_bounds = array<i64: 512, 256>}, {transform_indices = @transform_3, window_bounds = array<i64: 1>}, {transform_indices = @transform_4, window_bounds = array<i64: 2, 4, 256>}]} {
    %c0 = arith.constant 0 : index
    %0 = memref.load %arg4[%c0] : memref<1xf32, #tpu.memory_space<smem>>
    %c0_0 = arith.constant 0 : index
    %c0_1 = arith.constant 0 : index
    %c0_2 = arith.constant 0 : index
    %1 = vector.load %arg1[%c0_0, %c0_1, %c0_2] : memref<2x4x256xf32, #tpu.memory_space<vmem>>, vector<1x4x256xf32>
    %2 = vector.shape_cast %1 : vector<1x4x256xf32> to vector<4x256xf32>
    %3 = arith.truncf %2 : vector<4x256xf32> to vector<4x256xbf16>
    %c0_3 = arith.constant 0 : index
    %c0_4 = arith.constant 0 : index
    %4 = vector.load %arg2[%c0_3, %c0_4] : memref<256x768xbf16, #tpu.memory_space<vmem>>, vector<256x768xbf16>
    %cst = arith.constant dense<0.000000e+00> : vector<4x768xf32>
    %5 = tpu.matmul %3, %4, %cst {dimension_numbers = #tpu.dot_dimension_numbers<[1], [0], [0], [1], [0, 0, 1, 1], [], []>} : vector<4x256xbf16>, vector<256x768xbf16>, vector<4x768xf32> -> vector<4x768xf32>
    %6 = vector.extract_strided_slice %5 {offsets = [0, 0], sizes = [4, 256], strides = [1, 1]} : vector<4x768xf32> to vector<4x256xf32>
    %7 = vector.extract_strided_slice %5 {offsets = [0, 256], sizes = [4, 256], strides = [1, 1]} : vector<4x768xf32> to vector<4x256xf32>
    %8 = vector.extract_strided_slice %5 {offsets = [0, 512], sizes = [4, 256], strides = [1, 1]} : vector<4x768xf32> to vector<4x256xf32>
    %9 = arith.maximumf %6, %7 : vector<4x256xf32>
    %10 = arith.maximumf %8, %2 : vector<4x256xf32>
    %11 = arith.maximumf %9, %10 : vector<4x256xf32>
    %12 = arith.addf %6, %7 : vector<4x256xf32>
    %13 = arith.addf %8, %2 : vector<4x256xf32>
    %14 = arith.addf %12, %13 : vector<4x256xf32>
    %cst_5 = arith.constant dense<0xFF800000> : vector<256xf32>
    %15 = vector.multi_reduction <maximumf>, %11, %cst_5 [0] : vector<4x256xf32> to vector<256xf32>
    %16 = vector.shape_cast %15 : vector<256xf32> to vector<1x256xf32>
    %cst_6 = arith.constant dense<0.000000e+00> : vector<256xf32>
    %17 = vector.multi_reduction <add>, %14, %cst_6 [0] : vector<4x256xf32> to vector<256xf32>
    %18 = vector.shape_cast %17 : vector<256xf32> to vector<1x256xf32>
    %cst_7 = arith.constant 6.250000e-02 : f32
    %19 = vector.broadcast %cst_7 : f32 to vector<1x256xf32>
    %20 = arith.mulf %18, %19 : vector<1x256xf32>
    %21 = tpu.concatenate %16, %20 in 1 : vector<1x256xf32>, vector<1x256xf32> -> vector<1x512xf32>
    %c0_8 = arith.constant 0 : index
    %c0_9 = arith.constant 0 : index
    %22 = vector.load %arg3[%c0_8, %c0_9] : memref<512x256xf32, #tpu.memory_space<vmem>>, vector<512x256xf32>
    %cst_10 = arith.constant dense<0.000000e+00> : vector<1x256xf32>
    %23 = tpu.matmul %21, %22, %cst_10 {dimension_numbers = #tpu.dot_dimension_numbers<[1], [0], [0], [1], [0, 0, 1, 1], [], []>} : vector<1x512xf32>, vector<512x256xf32>, vector<1x256xf32> -> vector<1x256xf32>
    %24 = vector.broadcast %0 : f32 to vector<1x256xf32>
    %25 = arith.addf %23, %24 : vector<1x256xf32>
    %cst_11 = arith.constant 0.000000e+00 : f32
    %26 = vector.broadcast %cst_11 : f32 to vector<1x256xf32>
    %27 = arith.subf %26, %25 : vector<1x256xf32>
    %28 = math.exp %27 : vector<1x256xf32>
    %cst_12 = arith.constant 1.000000e+00 : f32
    %29 = vector.broadcast %cst_12 : f32 to vector<1x256xf32>
    %30 = arith.addf %29, %28 : vector<1x256xf32>
    %31 = tpu.reciprocal %30 {approx = true} : vector<1x256xf32> -> vector<1x256xf32>
    %32 = vector.broadcast %31 : vector<1x256xf32> to vector<4x256xf32>
    %33 = arith.mulf %2, %32 : vector<4x256xf32>
    %c0_13 = arith.constant 0 : index
    %c0_14 = arith.constant 0 : index
    %c0_15 = arith.constant 0 : index
    %34 = vector.load %arg5[%c0_13, %c0_14, %c0_15] : memref<2x4x256xf32, #tpu.memory_space<vmem>>, vector<1x4x256xf32>
    %35 = vector.shape_cast %34 : vector<1x4x256xf32> to vector<4x256xf32>
    %36 = vector.shape_cast %33 : vector<4x256xf32> to vector<1x4x256xf32>
    tpu.vector_store %arg5[%c0_13, %c0_14, %c0_15], %36 {strides = array<i32>} : memref<2x4x256xf32, #tpu.memory_space<vmem>>, vector<1x4x256xf32>,
    %c1 = arith.constant 1 : index
    %c0_16 = arith.constant 0 : index
    %c0_17 = arith.constant 0 : index
    %37 = vector.load %arg1[%c1, %c0_16, %c0_17] : memref<2x4x256xf32, #tpu.memory_space<vmem>>, vector<1x4x256xf32>
    %38 = vector.shape_cast %37 : vector<1x4x256xf32> to vector<4x256xf32>
    %39 = arith.truncf %38 : vector<4x256xf32> to vector<4x256xbf16>
    %c0_18 = arith.constant 0 : index
    %c0_19 = arith.constant 0 : index
    %40 = vector.load %arg2[%c0_18, %c0_19] : memref<256x768xbf16, #tpu.memory_space<vmem>>, vector<256x768xbf16>
    %cst_20 = arith.constant dense<0.000000e+00> : vector<4x768xf32>
    %41 = tpu.matmul %39, %40, %cst_20 {dimension_numbers = #tpu.dot_dimension_numbers<[1], [0], [0], [1], [0, 0, 1, 1], [], []>} : vector<4x256xbf16>, vector<256x768xbf16>, vector<4x768xf32> -> vector<4x768xf32>
    %42 = vector.extract_strided_slice %41 {offsets = [0, 0], sizes = [4, 256], strides = [1, 1]} : vector<4x768xf32> to vector<4x256xf32>
    %43 = vector.extract_strided_slice %41 {offsets = [0, 256], sizes = [4, 256], strides = [1, 1]} : vector<4x768xf32> to vector<4x256xf32>
    %44 = vector.extract_strided_slice %41 {offsets = [0, 512], sizes = [4, 256], strides = [1, 1]} : vector<4x768xf32> to vector<4x256xf32>
    %45 = arith.maximumf %42, %43 : vector<4x256xf32>
    %46 = arith.maximumf %44, %38 : vector<4x256xf32>
    %47 = arith.maximumf %45, %46 : vector<4x256xf32>
    %48 = arith.addf %42, %43 : vector<4x256xf32>
    %49 = arith.addf %44, %38 : vector<4x256xf32>
    %50 = arith.addf %48, %49 : vector<4x256xf32>
    %cst_21 = arith.constant dense<0xFF800000> : vector<256xf32>
    %51 = vector.multi_reduction <maximumf>, %47, %cst_21 [0] : vector<4x256xf32> to vector<256xf32>
    %52 = vector.shape_cast %51 : vector<256xf32> to vector<1x256xf32>
    %cst_22 = arith.constant dense<0.000000e+00> : vector<256xf32>
    %53 = vector.multi_reduction <add>, %50, %cst_22 [0] : vector<4x256xf32> to vector<256xf32>
    %54 = vector.shape_cast %53 : vector<256xf32> to vector<1x256xf32>
    %cst_23 = arith.constant 6.250000e-02 : f32
    %55 = vector.broadcast %cst_23 : f32 to vector<1x256xf32>
    %56 = arith.mulf %54, %55 : vector<1x256xf32>
    %57 = tpu.concatenate %52, %56 in 1 : vector<1x256xf32>, vector<1x256xf32> -> vector<1x512xf32>
    %c0_24 = arith.constant 0 : index
    %c0_25 = arith.constant 0 : index
    %58 = vector.load %arg3[%c0_24, %c0_25] : memref<512x256xf32, #tpu.memory_space<vmem>>, vector<512x256xf32>
    %cst_26 = arith.constant dense<0.000000e+00> : vector<1x256xf32>
    %59 = tpu.matmul %57, %58, %cst_26 {dimension_numbers = #tpu.dot_dimension_numbers<[1], [0], [0], [1], [0, 0, 1, 1], [], []>} : vector<1x512xf32>, vector<512x256xf32>, vector<1x256xf32> -> vector<1x256xf32>
    %60 = vector.broadcast %0 : f32 to vector<1x256xf32>
    %61 = arith.addf %59, %60 : vector<1x256xf32>
    %cst_27 = arith.constant 0.000000e+00 : f32
    %62 = vector.broadcast %cst_27 : f32 to vector<1x256xf32>
    %63 = arith.subf %62, %61 : vector<1x256xf32>
    %64 = math.exp %63 : vector<1x256xf32>
    %cst_28 = arith.constant 1.000000e+00 : f32
    %65 = vector.broadcast %cst_28 : f32 to vector<1x256xf32>
    %66 = arith.addf %65, %64 : vector<1x256xf32>
    %67 = tpu.reciprocal %66 {approx = true} : vector<1x256xf32> -> vector<1x256xf32>
    %68 = vector.broadcast %67 : vector<1x256xf32> to vector<4x256xf32>
    %69 = arith.mulf %38, %68 : vector<4x256xf32>
    %c1_29 = arith.constant 1 : index
    %c0_30 = arith.constant 0 : index
    %c0_31 = arith.constant 0 : index
    %70 = vector.load %arg5[%c1_29, %c0_30, %c0_31] : memref<2x4x256xf32, #tpu.memory_space<vmem>>, vector<1x4x256xf32>
    %71 = vector.shape_cast %70 : vector<1x4x256xf32> to vector<4x256xf32>
    %72 = vector.shape_cast %69 : vector<4x256xf32> to vector<1x4x256xf32>
    tpu.vector_store %arg5[%c1_29, %c0_30, %c0_31], %72 {strides = array<i32>} : memref<2x4x256xf32, #tpu.memory_space<vmem>>, vector<1x4x256xf32>,
    return
  }
  func.func @transform_0(%arg0: i32) -> (i32, i32, i32) {
    %c0_i32 = arith.constant 0 : i32
    %c0_i32_0 = arith.constant 0 : i32
    %c0_i32_1 = arith.constant 0 : i32
    return %arg0, %c0_i32, %c0_i32_0 : i32, i32, i32
  }
  func.func @transform_1(%arg0: i32) -> (i32, i32) {
    %c0_i32 = arith.constant 0 : i32
    %c0_i32_0 = arith.constant 0 : i32
    %c0_i32_1 = arith.constant 0 : i32
    return %c0_i32, %c0_i32_0 : i32, i32
  }
  func.func @transform_2(%arg0: i32) -> (i32, i32) {
    %c0_i32 = arith.constant 0 : i32
    %c0_i32_0 = arith.constant 0 : i32
    %c0_i32_1 = arith.constant 0 : i32
    return %c0_i32, %c0_i32_0 : i32, i32
  }
  func.func @transform_3(%arg0: i32) -> i32 {
    %c0_i32 = arith.constant 0 : i32
    %c0_i32_0 = arith.constant 0 : i32
    return %c0_i32 : i32
  }
  func.func @transform_4(%arg0: i32) -> (i32, i32, i32) {
    %c0_i32 = arith.constant 0 : i32
    %c0_i32_0 = arith.constant 0 : i32
    %c0_i32_1 = arith.constant 0 : i32
    return %arg0, %c0_i32, %c0_i32_0 : i32, i32, i32
  }
}

</mosaic_0001>

<bundles_post_ra>
// kernel: tpu_custom_call.1
= control target key start
LH: loop header
LB: loop body
LE: loop exit
PB: predicated region body
PF: predicated region fallthrough
CT: control target
= control target key end

     0   :  { %10 = vsyncpa [#allocation4], 0  ;;  %s3433_s0 = inlined_call_operand.hbm [shape: f32[2,4,256], index: 0, kind: input, shape index: {}]   ;;  %s3434_s1 = inlined_call_operand.hbm [shape: bf16[256,768], index: 1, kind: input, shape index: {}]   ;;  %s3435_s2 = inlined_call_operand.hbm [shape: f32[512,256], index: 2, kind: input, shape index: {}]   ;;  %s3436_s3 = inlined_call_operand.<no memory space> [shape: f32[1], index: 3, kind: input, shape index: {}]   ;;  %s3437_s4 = inlined_call_operand.hbm [shape: f32[2,4,256], index: 4, kind: output, shape index: {}]  }
   0x1   :  { %11 = vsyncpa [#allocation7], 0 }
   0x2   :  { %12 = vsyncpa [#allocation5], 0  ;;  %s2985_s15 = smov [#allocation6]   ;;  %s2891_s19 = scalar_lea.hbm %s3434_s1, 12288 }
   0x3   :  { %s30_s16 = sshll.u32 %s2985_s15, 4  ;;  %p2892_p0 = scmp.ne.s32.totalorder %s3434_s1, %s2891_s19  ;;  %s31_s16 = int_to_ptr.vmem [resolvable:$true] %s30_s16 }
   0x4   :  { %p2895_p1 = scmp.lt.u32.totalorder %s2891_s19, %s3434_s1 }
   0x6   :  { %p2897_p2 = pnand %p2895_p1, %p2892_p0 }
   0x8   :  { %2900 = shalt.err (!%p2897_p2)
}
   0x9   :  { %s2901_s24 = scalar_lea.vmem %s31_s16, 12288  ;;  %p2906_p4 = scmp.lt.s32.totalorder %s31_s16, %s31_s16 }
   0xa   :  { %p2902_p3 = scmp.ne.s32.totalorder %s31_s16, %s2901_s24  ;;  %p2907_p5 = scmp.lt.s32.totalorder %s2901_s24, %s2901_s24 }
   0xc   :  { %p2908_p6 = por %p2907_p5, %p2906_p4 }
   0xe   :  { %p2909_p7 = pnand %p2908_p6, %p2902_p3 }
  0x10   :  { %2912 = shalt.err (!%p2909_p7)
}
  0x11   :  { %s2986_s25 = smov 384   ;;  %s2987_s26 = smov 24  }
  0x12   :  { %36 = dma.hbm_to_vmem [thread:$0]  %s3434_s1, 12288, %s31_s16, [#allocation7], %s2986_s25, %s2986_s25, %s2987_s26  }
  0x13   :  { %s2988_s29 = smov [#allocation3]   ;;  %s2913_s7 = scalar_lea.hbm %s3433_s0, 256 }
  0x14   :  { %s18_s30 = sshll.u32 %s2988_s29, 4  ;;  %p2914_p8 = scmp.ne.s32.totalorder %s3433_s0, %s2913_s7  ;;  %s19_s30 = int_to_ptr.vmem [resolvable:$true] %s18_s30 }
  0x15   :  { %p2917_p9 = scmp.lt.u32.totalorder %s2913_s7, %s3433_s0 }
  0x17   :  { %p2919_p10 = pnand %p2917_p9, %p2914_p8 }
  0x19   :  { %2922 = shalt.err (!%p2919_p10)
}
  0x1a   :  { %s2923_s12 = scalar_lea.vmem %s19_s30, 256  ;;  %p2928_p12 = scmp.lt.s32.totalorder %s19_s30, %s19_s30 }
  0x1b   :  { %p2924_p11 = scmp.ne.s32.totalorder %s19_s30, %s2923_s12  ;;  %p2929_p13 = scmp.lt.s32.totalorder %s2923_s12, %s2923_s12 }
  0x1d   :  { %p2930_p0 = por %p2929_p13, %p2928_p12 }
  0x1f   :  { %p2931_p1 = pnand %p2930_p0, %p2924_p11 }
  0x21   :  { %2934 = shalt.err (!%p2931_p1)
}
  0x22   :  { %s2989_s1 = smov 128   ;;  %s2990_s13 = smov 8  }
  0x23   :  { %24 = dma.hbm_to_vmem [thread:$0]  %s3433_s0, 256, %s19_s30, [#allocation4], %s2989_s1, %s2989_s1, %s2990_s13  }
  0x24   :  { %s2991_s16 = smov [#allocation8]   ;;  %s2935_s20 = scalar_lea.hbm %s3435_s2, 16384 }
  0x25   :  { %s42_s17 = sshll.u32 %s2991_s16, 4  ;;  %p2936_p2 = scmp.ne.s32.totalorder %s3435_s2, %s2935_s20  ;;  %s43_s17 = int_to_ptr.vmem [resolvable:$true] %s42_s17 }
  0x26   :  { %p2939_p3 = scmp.lt.u32.totalorder %s2935_s20, %s3435_s2 }
  0x28   :  { %p2941_p4 = pnand %p2939_p3, %p2936_p2 }
  0x2a   :  { %2944 = shalt.err (!%p2941_p4)
}
  0x2b   :  { %s2945_s25 = scalar_lea.vmem %s43_s17, 16384  ;;  %p2950_p6 = scmp.lt.s32.totalorder %s43_s17, %s43_s17 }
  0x2c   :  { %p2946_p5 = scmp.ne.s32.totalorder %s43_s17, %s2945_s25  ;;  %p2951_p7 = scmp.lt.s32.totalorder %s2945_s25, %s2945_s25 }
  0x2e   :  { %p2952_p8 = por %p2951_p7, %p2950_p6 }
  0x30   :  { %p2953_p9 = pnand %p2952_p8, %p2946_p5 }
  0x32   :  { %2956 = shalt.err (!%p2953_p9)
}
  0x33   :  { %s2992_s0 = smov 256   ;;  %s2993_s26 = smov 16  }
  0x34   :  { %48 = dma.hbm_to_vmem [thread:$0]  %s3435_s2, 16384, %s43_s17, [#allocation7], %s2992_s0, %s2992_s0, %s2993_s26  }
  0x35   :  { %2979 = dma.done.wait [#allocation4], 256  }
  0x36   :  { %2980 = vsyncadd [#allocation4], 4294967040 }
  0x37   :  { %2981 = dma.done.wait [#allocation7], 28672  }
  0x38   :  { %2982 = vsyncadd [#allocation7], 4294938624  ;;  %v3059_v0 = vld [vmem:[#allocation6 + $0x4] ss:$24 sps:$4 sm:$0xff]   ;;  %v3062_v2 = vld [vmem:[#allocation6] ss:$24 sps:$4 sm:$0xff]  }
  0x39   :  { %v2633_v1 = vld [vmem:[#allocation6 + $0xc] ss:$24 sps:$4 sm:$0xff]   ;;  %643 = vmatprep.subr.bf16.mxu0 %v3059_v0  ;;  %v2636_v3 = vld [vmem:[#allocation6 + $0x8] ss:$24 sps:$4 sm:$0xff]   ;;  %v2639_v5 = vld [vmem:[#allocation6 + $0x3c] ss:$24 sps:$4 sm:$0xff]  }
  0x3a   :  { %684 = vmatprep.subr.bf16.mxu1 %v2633_v1  ;;  %v3064_v4 = vld [vmem:[#allocation6 + $0x34] ss:$24 sps:$4 sm:$0xff]   ;;  %644 = vmatpush1.bf16.msra.mxu0 %v3062_v2  ;;  %v3067_v6 = vld [vmem:[#allocation6 + $0x30] ss:$24 sps:$4 sm:$0xff]   ;;  %v3070_v8 = vld [vmem:[#allocation6 + $0x64] ss:$24 sps:$4 sm:$0xff]  }
  0x3b   :  { %685 = vmatpush1.bf16.msra.mxu1 %v2636_v3  ;;  %645 = vmatprep.subr.bf16.mxu0 %v3064_v4  ;;  %v2642_v7 = vld [vmem:[#allocation6 + $0x38] ss:$24 sps:$4 sm:$0xff]   ;;  %v2645_v9 = vld [vmem:[#allocation6 + $0x6c] ss:$24 sps:$4 sm:$0xff]   ;;  %v2648_v11 = vld [vmem:[#allocation6 + $0x68] ss:$24 sps:$4 sm:$0xff]  }
  0x3c   :  { %686 = vmatprep.subr.bf16.mxu1 %v2639_v5  ;;  %v3072_v10 = vld [vmem:[#allocation6 + $0x60] ss:$24 sps:$4 sm:$0xff]   ;;  %v3075_v12 = vld [vmem:[#allocation6 + $0x94] ss:$24 sps:$4 sm:$0xff]   ;;  %v3078_v14 = vld [vmem:[#allocation6 + $0x90] ss:$24 sps:$4 sm:$0xff]  }
  0x3d   :  { %v2651_v13 = vld [vmem:[#allocation6 + $0x9c] ss:$24 sps:$4 sm:$0xff]   ;;  %v2654_v15 = vld [vmem:[#allocation6 + $0x98] ss:$24 sps:$4 sm:$0xff]   ;;  %v2657_v17 = vld [vmem:[#allocation6 + $0xcc] ss:$24 sps:$4 sm:$0xff]  }
  0x3e   :  { %646 = vmatpush1.bf16.msra.mxu0 %v3067_v6  ;;  %v3081_v16 = vld [vmem:[#allocation6 + $0xc4] ss:$24 sps:$4 sm:$0xff]   ;;  %v3084_v18 = vld [vmem:[#allocation6 + $0xc0] ss:$24 sps:$4 sm:$0xff]   ;;  %v3087_v20 = vld [vmem:[#allocation6 + $0xf4] ss:$24 sps:$4 sm:$0xff]  }
  0x3f   :  { %687 = vmatpush1.bf16.msra.mxu1 %v2642_v7  ;;  %647 = vmatprep.subr.bf16.mxu0 %v3070_v8  ;;  %v2660_v19 = vld [vmem:[#allocation6 + $0xc8] ss:$24 sps:$4 sm:$0xff]   ;;  %v2663_v21 = vld [vmem:[#allocation6 + $0xfc] ss:$24 sps:$4 sm:$0xff]   ;;  %v2666_v23 = vld [vmem:[#allocation6 + $0xf8] ss:$24 sps:$4 sm:$0xff]  }
  0x40   :  { %688 = vmatprep.subr.bf16.mxu1 %v2645_v9  ;;  %v3090_v22 = vld [vmem:[#allocation6 + $0xf0] ss:$24 sps:$4 sm:$0xff]   ;;  %v3093_v24 = vld [vmem:[#allocation6 + $0x124] ss:$24 sps:$4 sm:$0xff]   ;;  %v3096_v26 = vld [vmem:[#allocation6 + $0x120] ss:$24 sps:$4 sm:$0xff]  }
  0x41   :  { %v2669_v25 = vld [vmem:[#allocation6 + $0x12c] ss:$24 sps:$4 sm:$0xff]   ;;  %v2672_v27 = vld [vmem:[#allocation6 + $0x128] ss:$24 sps:$4 sm:$0xff]   ;;  %v2675_v29 = vld [vmem:[#allocation6 + $0x15c] ss:$24 sps:$4 sm:$0xff]  }
  0x42   :  { %648 = vmatpush1.bf16.msra.mxu0 %v3072_v10  ;;  %v3099_v28 = vld [vmem:[#allocation6 + $0x154] ss:$24 sps:$4 sm:$0xff]   ;;  %v3102_v30 = vld [vmem:[#allocation6 + $0x150] ss:$24 sps:$4 sm:$0xff]   ;;  %v3105_v32 = vld [vmem:[#allocation6 + $0x184] ss:$24 sps:$4 sm:$0xff]  }
  0x43   :  { %689 = vmatpush1.bf16.msra.mxu1 %v2648_v11  ;;  %649 = vmatprep.subr.bf16.mxu0 %v3075_v12  ;;  %v2678_v31 = vld [vmem:[#allocation6 + $0x158] ss:$24 sps:$4 sm:$0xff]   ;;  %v2681_v33 = vld [vmem:[#allocation6 + $0x18c] ss:$24 sps:$4 sm:$0xff]   ;;  %v2684_v35 = vld [vmem:[#allocation6 + $0x188] ss:$24 sps:$4 sm:$0xff]  }
  0x44   :  { %690 = vmatprep.subr.bf16.mxu1 %v2651_v13  ;;  %v3108_v34 = vld [vmem:[#allocation6 + $0x180] ss:$24 sps:$4 sm:$0xff]   ;;  %v3111_v36 = vld [vmem:[#allocation6 + $0x1b4] ss:$24 sps:$4 sm:$0xff]   ;;  %v3114_v38 = vld [vmem:[#allocation6 + $0x1b0] ss:$24 sps:$4 sm:$0xff]  }
  0x45   :  { %v2687_v37 = vld [vmem:[#allocation6 + $0x1bc] ss:$24 sps:$4 sm:$0xff]   ;;  %v2690_v39 = vld [vmem:[#allocation6 + $0x1b8] ss:$24 sps:$4 sm:$0xff]   ;;  %v2693_v41 = vld [vmem:[#allocation6 + $0x1ec] ss:$24 sps:$4 sm:$0xff]  }
  0x46   :  { %650 = vmatpush1.bf16.msra.mxu0 %v3078_v14  ;;  %v3117_v40 = vld [vmem:[#allocation6 + $0x1e4] ss:$24 sps:$4 sm:$0xff]   ;;  %v3120_v42 = vld [vmem:[#allocation6 + $0x1e0] ss:$24 sps:$4 sm:$0xff]   ;;  %v3123_v44 = vld [vmem:[#allocation6 + $0x214] ss:$24 sps:$4 sm:$0xff]  }
  0x47   :  { %691 = vmatpush1.bf16.msra.mxu1 %v2654_v15  ;;  %651 = vmatprep.subr.bf16.mxu0 %v3081_v16  ;;  %v2696_v43 = vld [vmem:[#allocation6 + $0x1e8] ss:$24 sps:$4 sm:$0xff]   ;;  %v2699_v45 = vld [vmem:[#allocation6 + $0x21c] ss:$24 sps:$4 sm:$0xff]   ;;  %v2702_v49 = vld [vmem:[#allocation6 + $0x218] ss:$24 sps:$4 sm:$0xff]  }
  0x48   :  { %692 = vmatprep.subr.bf16.mxu1 %v2657_v17  ;;  %v61_v46 = vld [vmem:[#allocation3] sm:$0xff]  ;;  %v3132_v50 = vld [vmem:[#allocation6 + $0x244] ss:$24 sps:$4 sm:$0xff]   ;;  %v3136_v53 = vld [vmem:[#allocation6 + $0x240] ss:$24 sps:$4 sm:$0xff]   ;;  %vm778_vm0 = vcmask 1043456  }
  0x49   :  { %v3126_v47 = vld [vmem:[#allocation6 + $0x210] ss:$24 sps:$4 sm:$0xff]   ;;  %v3128_v48 = vcombine.high %v61_v46, %v61_v46  ;;  %v2705_v51 = vld [vmem:[#allocation6 + $0x24c] ss:$24 sps:$4 sm:$0xff]   ;;  %v2711_v56 = vld [vmem:[#allocation6 + $0x27c] ss:$24 sps:$4 sm:$0xff]   ;;  %v3158_v9 = vpack.c.bf16 %v61_v46, %v61_v46 }
  0x4a   :  { %652 = vmatpush1.bf16.msra.mxu0 %v3084_v18  ;;  %v2708_v54 = vld [vmem:[#allocation6 + $0x248] ss:$24 sps:$4 sm:$0xff]   ;;  %v3140_v55 = vld [vmem:[#allocation6 + $0x274] ss:$24 sps:$4 sm:$0xff]   ;;  %v2714_v58 = vld [vmem:[#allocation6 + $0x278] ss:$24 sps:$4 sm:$0xff]  }
  0x4b   :  { %693 = vmatpush1.bf16.msra.mxu1 %v2660_v19  ;;  %653 = vmatprep.subr.bf16.mxu0 %v3087_v20  ;;  %v66_v52 = vpack.c.bf16 %v3128_v48, %v3128_v48  ;;  %v3142_v57 = vld [vmem:[#allocation6 + $0x270] ss:$24 sps:$4 sm:$0xff]   ;;  %v3146_v59 = vld [vmem:[#allocation6 + $0x2a4] ss:$24 sps:$4 sm:$0xff]   ;;  %v3148_v61 = vld [vmem:[#allocation6 + $0x2a0] ss:$24 sps:$4 sm:$0xff]  }
  0x4c   :  { %694 = vmatprep.subr.bf16.mxu1 %v2663_v21  ;;  %v2717_v60 = vld [vmem:[#allocation6 + $0x2ac] ss:$24 sps:$4 sm:$0xff]   ;;  %v2720_v62 = vld [vmem:[#allocation6 + $0x2a8] ss:$24 sps:$4 sm:$0xff]   ;;  %v2723_v1 = vld [vmem:[#allocation6 + $0x2dc] ss:$24 sps:$4 sm:$0xff]  }
  0x4d   :  { %675 = vmatprep.mubr.bf16.mxu0 %v66_v52  ;;  %716 = vmatprep.mubr.bf16.mxu1 %v66_v52  ;;  %v3152_v63 = vld [vmem:[#allocation6 + $0x2d4] ss:$24 sps:$4 sm:$0xff]   ;;  %v3154_v3 = vld [vmem:[#allocation6 + $0x2d0] ss:$24 sps:$4 sm:$0xff]   ;;  %v2733_v13 = vld [vmem:[#allocation6 + $0x44] ss:$24 sps:$4 sm:$0xff]  }
  0x4e   :  { %654 = vmatpush1.bf16.msra.mxu0 %v3090_v22  ;;  %v2726_v5 = vld [vmem:[#allocation6 + $0x2d8] ss:$24 sps:$4 sm:$0xff]   ;;  %v2730_v7 = vld [vmem:[#allocation6 + $0x14] ss:$24 sps:$4 sm:$0xff]   ;;  %v2739_v21 = vld [vmem:[#allocation6 + $0xa4] ss:$24 sps:$4 sm:$0xff]  }
  0x4f   :  { %695 = vmatpush1.bf16.msra.mxu1 %v2666_v23  ;;  %655 = vmatprep.subr.bf16.mxu0 %v3093_v24  ;;  %v2728_v11 = vld [vmem:[#allocation6 + $0x10] ss:$24 sps:$4 sm:$0xff]   ;;  %v2731_v15 = vld [vmem:[#allocation6 + $0x40] ss:$24 sps:$4 sm:$0xff]   ;;  %v2736_v17 = vld [vmem:[#allocation6 + $0x74] ss:$24 sps:$4 sm:$0xff]  }
  0x50   :  { %696 = vmatprep.subr.bf16.mxu1 %v2669_v25  ;;  %v2734_v19 = vld [vmem:[#allocation6 + $0x70] ss:$24 sps:$4 sm:$0xff]   ;;  %v2737_v23 = vld [vmem:[#allocation6 + $0xa0] ss:$24 sps:$4 sm:$0xff]   ;;  %v2742_v25 = vld [vmem:[#allocation6 + $0xd4] ss:$24 sps:$4 sm:$0xff]  }
  0x51   :  { %v2755_v46 = vld [vmem:[#allocation6 + $0x1c0] ss:$24 sps:$4 sm:$0xff]  }
  0x52   :  { %656 = vmatpush1.bf16.msra.mxu0 %v3096_v26 }
  0x53   :  { %697 = vmatpush1.bf16.msra.mxu1 %v2672_v27  ;;  %657 = vmatprep.subr.bf16.mxu0 %v3099_v28  ;;  %v2740_v27 = vld [vmem:[#allocation6 + $0xd0] ss:$24 sps:$4 sm:$0xff]  }
  0x54   :  { %698 = vmatprep.subr.bf16.mxu1 %v2675_v29  ;;  %v2745_v29 = vld [vmem:[#allocation6 + $0x104] ss:$24 sps:$4 sm:$0xff]  }
  0x56   :  { %658 = vmatpush1.bf16.msra.mxu0 %v3102_v30 }
  0x57   :  { %699 = vmatpush1.bf16.msra.mxu1 %v2678_v31  ;;  %659 = vmatprep.subr.bf16.mxu0 %v3105_v32  ;;  %v2743_v31 = vld [vmem:[#allocation6 + $0x100] ss:$24 sps:$4 sm:$0xff]  }
  0x58   :  { %700 = vmatprep.subr.bf16.mxu1 %v2681_v33  ;;  %v2748_v33 = vld [vmem:[#allocation6 + $0x134] ss:$24 sps:$4 sm:$0xff]  }
  0x5a   :  { %660 = vmatpush1.bf16.msra.mxu0 %v3108_v34 }
  0x5b   :  { %701 = vmatpush1.bf16.msra.mxu1 %v2684_v35  ;;  %661 = vmatprep.subr.bf16.mxu0 %v3111_v36  ;;  %v2746_v35 = vld [vmem:[#allocation6 + $0x130] ss:$24 sps:$4 sm:$0xff]  }
  0x5c   :  { %702 = vmatprep.subr.bf16.mxu1 %v2687_v37  ;;  %v2751_v37 = vld [vmem:[#allocation6 + $0x164] ss:$24 sps:$4 sm:$0xff]  }
  0x5e   :  { %662 = vmatpush1.bf16.msra.mxu0 %v3114_v38 }
  0x5f   :  { %703 = vmatpush1.bf16.msra.mxu1 %v2690_v39  ;;  %663 = vmatprep.subr.bf16.mxu0 %v3117_v40  ;;  %v2749_v39 = vld [vmem:[#allocation6 + $0x160] ss:$24 sps:$4 sm:$0xff]  }
  0x60   :  { %704 = vmatprep.subr.bf16.mxu1 %v2693_v41  ;;  %v2754_v41 = vld [vmem:[#allocation6 + $0x194] ss:$24 sps:$4 sm:$0xff]  }
  0x62   :  { %664 = vmatpush1.bf16.msra.mxu0 %v3120_v42 }
  0x63   :  { %705 = vmatpush1.bf16.msra.mxu1 %v2696_v43  ;;  %665 = vmatprep.subr.bf16.mxu0 %v3123_v44  ;;  %v2752_v43 = vld [vmem:[#allocation6 + $0x190] ss:$24 sps:$4 sm:$0xff]  }
  0x64   :  { %706 = vmatprep.subr.bf16.mxu1 %v2699_v45  ;;  %v2757_v45 = vld [vmem:[#allocation6 + $0x1c4] ss:$24 sps:$4 sm:$0xff]  }
  0x66   :  { %666 = vmatpush1.bf16.msra.mxu0 %v3126_v47 }
  0x67   :  { %707 = vmatpush1.bf16.msra.mxu1 %v2702_v49  ;;  %667 = vmatprep.subr.bf16.mxu0 %v3132_v50  ;;  %v2760_v49 = vld [vmem:[#allocation6 + $0x1f4] ss:$24 sps:$4 sm:$0xff]  }
  0x68   :  { %708 = vmatprep.subr.bf16.mxu1 %v2705_v51  ;;  %v2758_v51 = vld [vmem:[#allocation6 + $0x1f0] ss:$24 sps:$4 sm:$0xff]  }
  0x6a   :  { %668 = vmatpush1.bf16.msra.mxu0 %v3136_v53 }
  0x6b   :  { %709 = vmatpush1.bf16.msra.mxu1 %v2708_v54  ;;  %669 = vmatprep.subr.bf16.mxu0 %v3140_v55  ;;  %v2761_v54 = vld [vmem:[#allocation6 + $0x220] ss:$24 sps:$4 sm:$0xff]  }
  0x6c   :  { %710 = vmatprep.subr.bf16.mxu1 %v2711_v56  ;;  %v2766_v56 = vld [vmem:[#allocation6 + $0x254] ss:$24 sps:$4 sm:$0xff]  }
  0x6e   :  { %670 = vmatpush1.bf16.msra.mxu0 %v3142_v57 }
  0x6f   :  { %711 = vmatpush1.bf16.msra.mxu1 %v2714_v58  ;;  %671 = vmatprep.subr.bf16.mxu0 %v3146_v59  ;;  %v2764_v58 = vld [vmem:[#allocation6 + $0x250] ss:$24 sps:$4 sm:$0xff]  }
  0x70   :  { %712 = vmatprep.subr.bf16.mxu1 %v2717_v60  ;;  %v2769_v60 = vld [vmem:[#allocation6 + $0x284] ss:$24 sps:$4 sm:$0xff]  }
  0x72   :  { %672 = vmatpush1.bf16.msra.mxu0 %v3148_v61 }
  0x73   :  { %713 = vmatpush1.bf16.msra.mxu1 %v2720_v62  ;;  %673 = vmatprep.subr.bf16.mxu0 %v3152_v63  ;;  %v2767_v62 = vld [vmem:[#allocation6 + $0x280] ss:$24 sps:$4 sm:$0xff]  }
  0x74   :  { %714 = vmatprep.subr.bf16.mxu1 %v2723_v1  ;;  %v2772_v1 = vld [vmem:[#allocation6 + $0x2b4] ss:$24 sps:$4 sm:$0xff]  }
  0x76   :  { %674 = vmatpush1.bf16.msra.mxu0 %v3154_v3 }
  0x77   :  { %715 = vmatpush1.bf16.msra.mxu1 %v2726_v5  ;;  %725 = vmatprep.subr.bf16.mxu0 %v2730_v7  ;;  %v2770_v5 = vld [vmem:[#allocation6 + $0x2b0] ss:$24 sps:$4 sm:$0xff]   ;;  %v2775_v7 = vld [vmem:[#allocation6 + $0x2e4] ss:$24 sps:$4 sm:$0xff]  }
  0x79   :  { %676 = vmatmul.mubr.bf16.vlgmr.msra.gmra.mrb[0].mxu0 %v3158_v9 }
  0x7a   :  { %717 = vmatmul.mubr.bf16.vlgmr.msra.gmra.mrb[0].mxu1 %v3158_v9  ;;  %726 = vmatpush1.bf16.msra.mxu0 %v2728_v11  ;;  %v2773_v11 = vld [vmem:[#allocation6 + $0x2e0] ss:$24 sps:$4 sm:$0xff]  }
  0x7b   :  { %757 = vmatprep.mubr.bf16.mxu0 %v66_v52  ;;  %727 = vmatprep.subr.bf16.mxu0 %v2733_v13  ;;  %v2763_v52 = vld [vmem:[#allocation6 + $0x224] ss:$24 sps:$4 sm:$0xff]  }
  0x7e   :  { %728 = vmatpush1.bf16.msra.mxu0 %v2731_v15  ;;  %v815_v15 = vld [vmem:[#allocation8 + $0x30] sm:$0xff] }
  0x7f   :  { %729 = vmatprep.subr.bf16.mxu0 %v2736_v17  ;;  %v819_v17 = vld [vmem:[#allocation8 + $0x50] sm:$0xff] }
  0x82   :  { %730 = vmatpush1.bf16.msra.mxu0 %v2734_v19  ;;  %v822_v19 = vld [vmem:[#allocation8 + $0x68] sm:$0xff] }
  0x83   :  { %731 = vmatprep.subr.bf16.mxu0 %v2739_v21  ;;  %v824_v21 = vld [vmem:[#allocation8 + $0x78] sm:$0xff] }
  0x86   :  { %732 = vmatpush1.bf16.msra.mxu0 %v2737_v23 }
  0x87   :  { %733 = vmatprep.subr.bf16.mxu0 %v2742_v25  ;;  %v2369_v25 = vpack.c.bf16 %v824_v21, %v822_v19  ;;  %v861_v21 = vld [vmem:[#allocation8 + $0x1a0] sm:$0xff] }
  0x8a   :  { %734 = vmatpush1.bf16.msra.mxu0 %v2740_v27  ;;  %v821_v27 = vld [vmem:[#allocation8 + $0x60] sm:$0xff] }
  0x8b   :  { %735 = vmatprep.subr.bf16.mxu0 %v2745_v29  ;;  %v826_v29 = vld [vmem:[#allocation8 + $0x88] sm:$0xff] }
  0x8e   :  { %736 = vmatpush1.bf16.msra.mxu0 %v2743_v31  ;;  %v828_v31 = vld [vmem:[#allocation8 + $0x98] sm:$0xff] }
  0x8f   :  { %737 = vmatprep.subr.bf16.mxu0 %v2748_v33  ;;  %v2373_v33 = vpack.c.bf16 %v828_v31, %v826_v29  ;;  %v865_v31 = vld [vmem:[#allocation8 + $0x1c0] sm:$0xff] }
  0x92   :  { %738 = vmatpush1.bf16.msra.mxu0 %v2746_v35  ;;  %v825_v35 = vld [vmem:[#allocation8 + $0x80] sm:$0xff] }
  0x93   :  { %739 = vmatprep.subr.bf16.mxu0 %v2751_v37  ;;  %v830_v37 = vld [vmem:[#allocation8 + $0xa8] sm:$0xff] }
  0x96   :  { %740 = vmatpush1.bf16.msra.mxu0 %v2749_v39  ;;  %v832_v39 = vld [vmem:[#allocation8 + $0xb8] sm:$0xff] }
  0x97   :  { %741 = vmatprep.subr.bf16.mxu0 %v2754_v41  ;;  %v2377_v41 = vpack.c.bf16 %v832_v39, %v830_v37  ;;  %v869_v37 = vld [vmem:[#allocation8 + $0x1e0] sm:$0xff] }
  0x9a   :  { %742 = vmatpush1.bf16.msra.mxu0 %v2752_v43  ;;  %v829_v43 = vld [vmem:[#allocation8 + $0xa0] sm:$0xff] }
  0x9b   :  { %743 = vmatprep.subr.bf16.mxu0 %v2757_v45  ;;  %v834_v45 = vld [vmem:[#allocation8 + $0xc8] sm:$0xff] }
  0x9e   :  { %744 = vmatpush1.bf16.msra.mxu0 %v2755_v46  ;;  %v836_v46 = vld [vmem:[#allocation8 + $0xd8] sm:$0xff] }
  0x9f   :  { %745 = vmatprep.subr.bf16.mxu0 %v2760_v49  ;;  %v2381_v49 = vpack.c.bf16 %v836_v46, %v834_v45  ;;  %v874_v45 = vld [vmem:[#allocation8 + $0x208] sm:$0xff]  ;;  %v876_v46 = vld [vmem:[#allocation8 + $0x218] sm:$0xff] }
  0xa2   :  { %746 = vmatpush1.bf16.msra.mxu0 %v2758_v51  ;;  %v833_v51 = vld [vmem:[#allocation8 + $0xc0] sm:$0xff] }
  0xa3   :  { %747 = vmatprep.subr.bf16.mxu0 %v2763_v52  ;;  %v838_v52 = vld [vmem:[#allocation8 + $0xe8] sm:$0xff] }
  0xa6   :  { %748 = vmatpush1.bf16.msra.mxu0 %v2761_v54  ;;  %v840_v54 = vld [vmem:[#allocation8 + $0xf8] sm:$0xff] }
  0xa7   :  { %749 = vmatprep.subr.bf16.mxu0 %v2766_v56  ;;  %v2385_v56 = vpack.c.bf16 %v840_v54, %v838_v52  ;;  %v2780_v54 = vld [vmem:[#allocation6 + $0x38] ss:$24 sps:$4 sm:$0xff]  }
  0xaa   :  { %750 = vmatpush1.bf16.msra.mxu0 %v2764_v58  ;;  %v837_v58 = vld [vmem:[#allocation8 + $0xe0] sm:$0xff] }
  0xab   :  { %751 = vmatprep.subr.bf16.mxu0 %v2769_v60  ;;  %v842_v60 = vld [vmem:[#allocation8 + $0x108] sm:$0xff] }
  0xae   :  { %752 = vmatpush1.bf16.msra.mxu0 %v2767_v62  ;;  %v844_v62 = vld [vmem:[#allocation8 + $0x118] sm:$0xff] }
  0xaf   :  { %753 = vmatprep.subr.bf16.mxu0 %v2772_v1  ;;  %v2389_v1 = vpack.c.bf16 %v844_v62, %v842_v60  ;;  %v2788_v60 = vld [vmem:[#allocation6 + $0x9c] ss:$24 sps:$4 sm:$0xff]   ;;  %v2789_v62 = vld [vmem:[#allocation6 + $0xc8] ss:$24 sps:$4 sm:$0xff]  }
  0xb2   :  { %754 = vmatpush1.bf16.msra.mxu0 %v2770_v5  ;;  %v841_v5 = vld [vmem:[#allocation8 + $0x100] sm:$0xff] }
  0xb3   :  { %755 = vmatprep.subr.bf16.mxu0 %v2775_v7  ;;  %v846_v7 = vld [vmem:[#allocation8 + $0x128] sm:$0xff] }
  0xb6   :  { %756 = vmatpush1.bf16.msra.mxu0 %v2773_v11  ;;  %v848_v11 = vld [vmem:[#allocation8 + $0x138] sm:$0xff] }
  0xb7   :  { %1687 = vmatprep.subr.bf16.mxu0 %v3059_v0  ;;  %v810_v0 = vld [vmem:[#allocation8 + $0x8] sm:$0xff] }
  0xb9   :  { %758 = vmatmul.mubr.bf16.vlgmr.msra.gmra.mrb[4].mxu0 %v3158_v9  ;;  %v816_v9 = vld [vmem:[#allocation8 + $0x38] sm:$0xff] }
  0xba   :  { %1688 = vmatpush1.bf16.msra.mxu0 %v3062_v2  ;;  %v812_v2 = vld [vmem:[#allocation8 + $0x18] sm:$0xff] }
  0xbb   :  { %1689 = vmatprep.subr.bf16.mxu0 %v3064_v4  ;;  %v809_v4 = vld [vmem:[#allocation8] sm:$0xff] }
  0xbe   :  { %1690 = vmatpush1.bf16.msra.mxu0 %v3067_v6  ;;  %v2357_v6 = vpack.c.bf16 %v812_v2, %v810_v0  ;;  %v2393_v0 = vpack.c.bf16 %v848_v11, %v846_v7  ;;  %v845_v2 = vld [vmem:[#allocation8 + $0x120] sm:$0xff]  ;;  %v2798_v11 = vld [vmem:[#allocation6 + $0x158] ss:$24 sps:$4 sm:$0xff]  }
  0xbf   :  { %1691 = vmatprep.subr.bf16.mxu0 %v3070_v8  ;;  %v811_v8 = vld [vmem:[#allocation8 + $0x10] sm:$0xff]  ;;  %v2797_v7 = vld [vmem:[#allocation6 + $0x12c] ss:$24 sps:$4 sm:$0xff]  }
  0xc0   :  { %2358 = vmatprep.subr.bf16.mxu1 %v2357_v6  ;;  %v852_v6 = vld [vmem:[#allocation8 + $0x158] sm:$0xff] }
  0xc2   :  { %1692 = vmatpush1.bf16.msra.mxu0 %v3072_v10  ;;  %v814_v10 = vld [vmem:[#allocation8 + $0x28] sm:$0xff] }
  0xc3   :  { %1693 = vmatprep.subr.bf16.mxu0 %v3075_v12  ;;  %v2359_v12 = vpack.c.bf16 %v811_v8, %v809_v4  ;;  %v2361_v13 = vpack.c.bf16 %v816_v9, %v814_v10  ;;  %v850_v4 = vld [vmem:[#allocation8 + $0x148] sm:$0xff]  ;;  %v849_v10 = vld [vmem:[#allocation8 + $0x140] sm:$0xff] }
  0xc4   :  { %v2397_v8 = vpack.c.bf16 %v852_v6, %v850_v4  ;;  %v854_v9 = vld [vmem:[#allocation8 + $0x168] sm:$0xff]  ;;  %v2806_v4 = vld [vmem:[#allocation6 + $0x1bc] ss:$24 sps:$4 sm:$0xff]  }
  0xc5   :  { %2360 = vmatpush1.bf16.msra.mxu1 %v2359_v12  ;;  %v856_v12 = vld [vmem:[#allocation8 + $0x178] sm:$0xff]  ;;  %v2807_v6 = vld [vmem:[#allocation6 + $0x1e8] ss:$24 sps:$4 sm:$0xff]  }
  0xc6   :  { %1694 = vmatpush1.bf16.msra.mxu0 %v3078_v14  ;;  %v813_v14 = vld [vmem:[#allocation8 + $0x20] sm:$0xff]  ;;  %2362 = vmatprep.subr.bf16.mxu1 %v2361_v13  ;;  %v2401_v13 = vpack.c.bf16 %v856_v12, %v854_v9 }
  0xc7   :  { %1695 = vmatprep.subr.bf16.mxu0 %v3081_v16  ;;  %v818_v16 = vld [vmem:[#allocation8 + $0x48] sm:$0xff] }
  0xca   :  { %1696 = vmatpush1.bf16.msra.mxu0 %v3084_v18  ;;  %v820_v18 = vld [vmem:[#allocation8 + $0x58] sm:$0xff] }
  0xcb   :  { %1697 = vmatprep.subr.bf16.mxu0 %v3087_v20  ;;  %v2363_v20 = vpack.c.bf16 %v815_v15, %v813_v14  ;;  %v853_v14 = vld [vmem:[#allocation8 + $0x160] sm:$0xff] }
  0xcd   :  { %2364 = vmatpush1.bf16.msra.mxu1 %v2363_v20  ;;  %v857_v20 = vld [vmem:[#allocation8 + $0x180] sm:$0xff] }
  0xce   :  { %1698 = vmatpush1.bf16.msra.mxu0 %v3090_v22  ;;  %v2365_v22 = vpack.c.bf16 %v820_v18, %v818_v16  ;;  %v858_v16 = vld [vmem:[#allocation8 + $0x188] sm:$0xff] }
  0xcf   :  { %1699 = vmatprep.subr.bf16.mxu0 %v3093_v24  ;;  %v817_v24 = vld [vmem:[#allocation8 + $0x40] sm:$0xff] }
  0xd0   :  { %v2367_v23 = vpack.c.bf16 %v819_v17, %v817_v24  ;;  %2366 = vmatprep.subr.bf16.mxu1 %v2365_v22  ;;  %v859_v22 = vld [vmem:[#allocation8 + $0x190] sm:$0xff]  ;;  %v862_v17 = vld [vmem:[#allocation8 + $0x1a8] sm:$0xff] }
  0xd1   :  { %v2407_v24 = vpack.c.bf16 %v859_v22, %v857_v20  ;;  %v2815_v20 = vld [vmem:[#allocation6 + $0x24c] ss:$24 sps:$4 sm:$0xff]  }
  0xd2   :  { %1700 = vmatpush1.bf16.msra.mxu0 %v3096_v26  ;;  %v823_v26 = vld [vmem:[#allocation8 + $0x70] sm:$0xff]  ;;  %2368 = vmatpush1.bf16.msra.mxu1 %v2367_v23 }
  0xd3   :  { %1701 = vmatprep.subr.bf16.mxu0 %v3099_v28  ;;  %v2371_v28 = vpack.c.bf16 %v823_v26, %v821_v27  ;;  %2370 = vmatprep.subr.bf16.mxu1 %v2369_v25  ;;  %v863_v23 = vld [vmem:[#allocation8 + $0x1b0] sm:$0xff]  ;;  %v866_v27 = vld [vmem:[#allocation8 + $0x1c8] sm:$0xff]  ;;  %v868_v26 = vld [vmem:[#allocation8 + $0x1d8] sm:$0xff] }
  0xd4   :  { %v2411_v25 = vpack.c.bf16 %v863_v23, %v861_v21  ;;  %v2413_v29 = vpack.c.bf16 %v868_v26, %v866_v27  ;;  %v2821_v21 = vld [vmem:[#allocation6 + $0x2ac] ss:$24 sps:$4 sm:$0xff]   ;;  %v2822_v23 = vld [vmem:[#allocation6 + $0x2d8] ss:$24 sps:$4 sm:$0xff]  }
  0xd5   :  { %v873_v27 = vld [vmem:[#allocation8 + $0x200] sm:$0xff]  ;;  %v875_v26 = vld [vmem:[#allocation8 + $0x210] sm:$0xff] }
  0xd6   :  { %1702 = vmatpush1.bf16.msra.mxu0 %v3102_v30  ;;  %v827_v30 = vld [vmem:[#allocation8 + $0x90] sm:$0xff]  ;;  %2372 = vmatpush1.bf16.msra.mxu1 %v2371_v28 }
  0xd7   :  { %1703 = vmatprep.subr.bf16.mxu0 %v3105_v32  ;;  %v2375_v32 = vpack.c.bf16 %v827_v30, %v825_v35  ;;  %2374 = vmatprep.subr.bf16.mxu1 %v2373_v33  ;;  %v867_v28 = vld [vmem:[#allocation8 + $0x1d0] sm:$0xff]  ;;  %v870_v35 = vld [vmem:[#allocation8 + $0x1e8] sm:$0xff]  ;;  %v872_v30 = vld [vmem:[#allocation8 + $0x1f8] sm:$0xff] }
  0xd8   :  { %v2415_v33 = vpack.c.bf16 %v867_v28, %v865_v31  ;;  %v2417_v39 = vpack.c.bf16 %v872_v30, %v870_v35  ;;  %v880_v31 = vld [vmem:[#allocation8 + $0x238] sm:$0xff]  ;;  %v3231_v28 = vpack.c.bf16 %v875_v26, %v873_v27  ;;  %v877_v35 = vld [vmem:[#allocation8 + $0x220] sm:$0xff]  ;;  %v879_v30 = vld [vmem:[#allocation8 + $0x230] sm:$0xff] }
  0xda   :  { %1704 = vmatpush1.bf16.msra.mxu0 %v3108_v34  ;;  %v831_v34 = vld [vmem:[#allocation8 + $0xb0] sm:$0xff]  ;;  %2376 = vmatpush1.bf16.msra.mxu1 %v2375_v32 }
  0xdb   :  { %1705 = vmatprep.subr.bf16.mxu0 %v3111_v36  ;;  %v2379_v36 = vpack.c.bf16 %v831_v34, %v829_v43  ;;  %2378 = vmatprep.subr.bf16.mxu1 %v2377_v41  ;;  %v871_v32 = vld [vmem:[#allocation8 + $0x1f0] sm:$0xff]  ;;  %v1105_v43 = vld [vmem:[#allocation3 + $0x8] sm:$0xff] }
  0xdc   :  { %v2419_v41 = vpack.c.bf16 %v871_v32, %v869_v37  ;;  %v3196_v34 = vcombine.high %v1105_v43, %v1105_v43  ;;  %v3206_v52 = vpack.c.bf16 %v1105_v43, %v1105_v43  ;;  %v882_v37 = vld [vmem:[#allocation8 + $0x248] sm:$0xff]  ;;  %v3238_v32 = vpack.c.bf16 %v879_v30, %v877_v35  ;;  %v881_v43 = vld [vmem:[#allocation8 + $0x240] sm:$0xff]  ;;  %v916_v30 = vld [vmem:[#allocation8 + $0x358] sm:$0xff] }
  0xdd   :  { %v914_v35 = vld [vmem:[#allocation8 + $0x348] sm:$0xff] }
  0xde   :  { %1706 = vmatpush1.bf16.msra.mxu0 %v3114_v38  ;;  %v835_v38 = vld [vmem:[#allocation8 + $0xd0] sm:$0xff]  ;;  %2380 = vmatpush1.bf16.msra.mxu1 %v2379_v36  ;;  %v3198_v36 = vpack.c.bf16 %v876_v46, %v874_v45  ;;  %v886_v46 = vld [vmem:[#allocation8 + $0x268] sm:$0xff] }
  0xdf   :  { %1707 = vmatprep.subr.bf16.mxu0 %v3117_v40  ;;  %v2383_v40 = vpack.c.bf16 %v835_v38, %v833_v51  ;;  %2382 = vmatprep.subr.bf16.mxu1 %v2381_v49  ;;  %v3202_v49 = vpack.c.bf16 %v3196_v34, %v3196_v34  ;;  %v2779_v51 = vld [vmem:[#allocation6 + $0xc] ss:$24 sps:$4 sm:$0xff]   ;;  %v2777_v38 = vld [vmem:[#allocation6 + $0x8] ss:$24 sps:$4 sm:$0xff]   ;;  %v883_v45 = vld [vmem:[#allocation8 + $0x250] sm:$0xff] }
  0xe1   :  { %1719 = vmatprep.mubr.bf16.mxu0 %v3202_v49 }
  0xe2   :  { %1708 = vmatpush1.bf16.msra.mxu0 %v3120_v42  ;;  %v839_v42 = vld [vmem:[#allocation8 + $0xf0] sm:$0xff]  ;;  %2384 = vmatpush1.bf16.msra.mxu1 %v2383_v40 }
  0xe3   :  { %1709 = vmatprep.subr.bf16.mxu0 %v3123_v44  ;;  %v2387_v44 = vpack.c.bf16 %v839_v42, %v837_v58  ;;  %2386 = vmatprep.subr.bf16.mxu1 %v2385_v56  ;;  %v2782_v40 = vld [vmem:[#allocation6 + $0x3c] ss:$24 sps:$4 sm:$0xff]   ;;  %v2783_v56 = vld [vmem:[#allocation6 + $0x68] ss:$24 sps:$4 sm:$0xff]   ;;  %v2785_v58 = vld [vmem:[#allocation6 + $0x6c] ss:$24 sps:$4 sm:$0xff]  }
  0xe4   :  { %v2786_v42 = vld [vmem:[#allocation6 + $0x98] ss:$24 sps:$4 sm:$0xff]  }
  0xe6   :  { %1710 = vmatpush1.bf16.msra.mxu0 %v3126_v47  ;;  %v843_v47 = vld [vmem:[#allocation8 + $0x110] sm:$0xff]  ;;  %2388 = vmatpush1.bf16.msra.mxu1 %v2387_v44  ;;  %v2791_v44 = vld [vmem:[#allocation6 + $0xcc] ss:$24 sps:$4 sm:$0xff]  }
  0xe7   :  { %1711 = vmatprep.subr.bf16.mxu0 %v3132_v50  ;;  %v2391_v50 = vpack.c.bf16 %v843_v47, %v841_v5  ;;  %2390 = vmatprep.subr.bf16.mxu1 %v2389_v1  ;;  %v2792_v1 = vld [vmem:[#allocation6 + $0xf8] ss:$24 sps:$4 sm:$0xff]   ;;  %v2794_v5 = vld [vmem:[#allocation6 + $0xfc] ss:$24 sps:$4 sm:$0xff]   ;;  %v2795_v47 = vld [vmem:[#allocation6 + $0x128] ss:$24 sps:$4 sm:$0xff]  }
  0xea   :  { %1712 = vmatpush1.bf16.msra.mxu0 %v3136_v53  ;;  %v847_v53 = vld [vmem:[#allocation8 + $0x130] sm:$0xff]  ;;  %2392 = vmatpush1.bf16.msra.mxu1 %v2391_v50 }
  0xeb   :  { %1713 = vmatprep.subr.bf16.mxu0 %v3140_v55  ;;  %v2395_v55 = vpack.c.bf16 %v847_v53, %v845_v2  ;;  %2394 = vmatprep.subr.bf16.mxu1 %v2393_v0  ;;  %v2800_v50 = vld [vmem:[#allocation6 + $0x15c] ss:$24 sps:$4 sm:$0xff]   ;;  %v2801_v0 = vld [vmem:[#allocation6 + $0x188] ss:$24 sps:$4 sm:$0xff]   ;;  %v2803_v2 = vld [vmem:[#allocation6 + $0x18c] ss:$24 sps:$4 sm:$0xff]  }
  0xec   :  { %v2804_v53 = vld [vmem:[#allocation6 + $0x1b8] ss:$24 sps:$4 sm:$0xff]  }
  0xee   :  { %1714 = vmatpush1.bf16.msra.mxu0 %v3142_v57  ;;  %v851_v57 = vld [vmem:[#allocation8 + $0x150] sm:$0xff]  ;;  %2396 = vmatpush1.bf16.msra.mxu1 %v2395_v55  ;;  %v2809_v55 = vld [vmem:[#allocation6 + $0x1ec] ss:$24 sps:$4 sm:$0xff]  }
  0xef   :  { %1715 = vmatprep.subr.bf16.mxu0 %v3146_v59  ;;  %v2399_v59 = vpack.c.bf16 %v851_v57, %v849_v10  ;;  %2398 = vmatprep.subr.bf16.mxu1 %v2397_v8  ;;  %v2810_v8 = vld [vmem:[#allocation6 + $0x218] ss:$24 sps:$4 sm:$0xff]   ;;  %v2812_v10 = vld [vmem:[#allocation6 + $0x21c] ss:$24 sps:$4 sm:$0xff]  }
  0xf2   :  { %1716 = vmatpush1.bf16.msra.mxu0 %v3148_v61  ;;  %2400 = vmatpush1.bf16.msra.mxu1 %v2399_v59  ;;  %v855_v61 = vld [vmem:[#allocation8 + $0x170] sm:$0xff] }
  0xf3   :  { %1717 = vmatprep.subr.bf16.mxu0 %v3152_v63  ;;  %2402 = vmatprep.subr.bf16.mxu1 %v2401_v13  ;;  %v2403_v15 = vpack.c.bf16 %v855_v61, %v853_v14  ;;  %v860_v63 = vld [vmem:[#allocation8 + $0x198] sm:$0xff] }
  0xf4   :  { %v2405_v18 = vpack.c.bf16 %v860_v63, %v858_v16 }
  0xf6   :  { %1718 = vmatpush1.bf16.msra.mxu0 %v3154_v3  ;;  %2404 = vmatpush1.bf16.msra.mxu1 %v2403_v15  ;;  %v864_v3 = vld [vmem:[#allocation8 + $0x1b8] sm:$0xff] }
  0xf7   :  { %2406 = vmatprep.subr.bf16.mxu1 %v2405_v18  ;;  %v2409_v19 = vpack.c.bf16 %v864_v3, %v862_v17  ;;  %1728 = vmatprep.subr.bf16.mxu0 %v2779_v51  ;;  %v2813_v18 = vld [vmem:[#allocation6 + $0x248] ss:$24 sps:$4 sm:$0xff]   ;;  %v2816_v17 = vld [vmem:[#allocation6 + $0x278] ss:$24 sps:$4 sm:$0xff]   ;;  %v2818_v3 = vld [vmem:[#allocation6 + $0x27c] ss:$24 sps:$4 sm:$0xff]   ;;  %v3244_v51 = vpack.c.bf16 %v883_v45, %v881_v43 }
  0xf8   :  { %v913_v43 = vld [vmem:[#allocation8 + $0x340] sm:$0xff]  ;;  %v915_v45 = vld [vmem:[#allocation8 + $0x350] sm:$0xff] }
  0xf9   :  { %1720 = vmatmul.mubr.bf16.vlgmr.msra.gmra.mrb[8].mxu0 %v3206_v52 }
  0xfa   :  { %2408 = vmatpush1.bf16.msra.mxu1 %v2407_v24  ;;  %1729 = vmatpush1.bf16.msra.mxu0 %v2777_v38 }
  0xfb   :  { %2410 = vmatprep.subr.bf16.mxu1 %v2409_v19  ;;  %1760 = vmatprep.mubr.bf16.mxu0 %v3202_v49  ;;  %v2819_v19 = vld [vmem:[#allocation6 + $0x2a8] ss:$24 sps:$4 sm:$0xff]  }
  0xfc   :  { %1730 = vmatprep.subr.bf16.mxu0 %v2782_v40  ;;  %v887_v40 = vld [vmem:[#allocation8 + $0x270] sm:$0xff] }
  0xfe   :  { %2412 = vmatpush1.bf16.msra.mxu1 %v2411_v25  ;;  %1731 = vmatpush1.bf16.msra.mxu0 %v2780_v54  ;;  %v2824_v25 = vld [vmem:[#allocation6 + $0x2dc] ss:$24 sps:$4 sm:$0xff]   ;;  %v885_v54 = vld [vmem:[#allocation8 + $0x260] sm:$0xff] }
  0xff   :  { %2414 = vmatprep.subr.bf16.mxu1 %v2413_v29  ;;  %1732 = vmatprep.subr.bf16.mxu0 %v2785_v58  ;;  %v878_v29 = vld [vmem:[#allocation8 + $0x228] sm:$0xff]  ;;  %v892_v58 = vld [vmem:[#allocation8 + $0x298] sm:$0xff] }
 0x102   :  { %2416 = vmatpush1.bf16.msra.mxu1 %v2415_v33  ;;  %1733 = vmatpush1.bf16.msra.mxu0 %v2783_v56  ;;  %v3233_v33 = vpack.c.bf16 %v880_v31, %v878_v29  ;;  %v890_v56 = vld [vmem:[#allocation8 + $0x288] sm:$0xff]  ;;  %v909_v29 = vld [vmem:[#allocation8 + $0x320] sm:$0xff]  ;;  %v911_v31 = vld [vmem:[#allocation8 + $0x330] sm:$0xff] }
 0x103   :  { %2418 = vmatprep.subr.bf16.mxu1 %v2417_v39  ;;  %1734 = vmatprep.subr.bf16.mxu0 %v2788_v60  ;;  %v884_v39 = vld [vmem:[#allocation8 + $0x258] sm:$0xff]  ;;  %v3252_v60 = vpack.c.bf16 %v892_v58, %v890_v56  ;;  %v917_v56 = vld [vmem:[#allocation8 + $0x360] sm:$0xff]  ;;  %v919_v58 = vld [vmem:[#allocation8 + $0x370] sm:$0xff] }
 0x106   :  { %2420 = vmatpush1.bf16.msra.mxu1 %v2419_v41  ;;  %1735 = vmatpush1.bf16.msra.mxu0 %v2786_v42  ;;  %v3240_v41 = vpack.c.bf16 %v884_v39, %v882_v37  ;;  %v3250_v42 = vpack.c.bf16 %v887_v40, %v885_v54  ;;  %v3286_v37 = vpack.c.bf16 %v911_v31, %v909_v29 }
 0x107   :  { %2422 = vmatprep.subr.bf16.mxu1 %v3198_v36  ;;  %1736 = vmatprep.subr.bf16.mxu0 %v2791_v44  ;;  %v891_v44 = vld [vmem:[#allocation8 + $0x290] sm:$0xff]  ;;  %v3288_v39 = vpack.c.bf16 %v916_v30, %v914_v35  ;;  %v3292_v54 = vpack.c.bf16 %v915_v45, %v913_v43  ;;  %v930_v43 = vld [vmem:[#allocation8 + $0x3c8] sm:$0xff]  ;;  %v932_v45 = vld [vmem:[#allocation8 + $0x3d8] sm:$0xff] }
 0x10a   :  { %1737 = vmatpush1.bf16.msra.mxu0 %v2789_v62  ;;  %v889_v62 = vld [vmem:[#allocation8 + $0x280] sm:$0xff] }
 0x10b   :  { %1738 = vmatprep.subr.bf16.mxu0 %v2794_v5  ;;  %v896_v5 = vld [vmem:[#allocation8 + $0x2b8] sm:$0xff] }
 0x10e   :  { %1739 = vmatpush1.bf16.msra.mxu0 %v2792_v1  ;;  %v894_v1 = vld [vmem:[#allocation8 + $0x2a8] sm:$0xff] }
 0x10f   :  { %1740 = vmatprep.subr.bf16.mxu0 %v2797_v7  ;;  %v3258_v7 = vpack.c.bf16 %v896_v5, %v894_v1  ;;  %v3298_v5 = vpack.c.bf16 %v919_v58, %v917_v56  ;;  %v2477_v56 = vpack.c.bf16 %v932_v45, %v930_v43  ;;  %v929_v58 = vld [vmem:[#allocation8 + $0x3c0] sm:$0xff] }
 0x110   :  { %v2854_v43 = vld [vmem:[#allocation6 + $0x1c4] ss:$24 sps:$4 sm:$0xff]   ;;  %v2852_v45 = vld [vmem:[#allocation6 + $0x1c0] ss:$24 sps:$4 sm:$0xff]  }
 0x112   :  { %1741 = vmatpush1.bf16.msra.mxu0 %v2795_v47  ;;  %v3256_v47 = vpack.c.bf16 %v891_v44, %v889_v62  ;;  %v922_v62 = vld [vmem:[#allocation8 + $0x388] sm:$0xff]  ;;  %v924_v44 = vld [vmem:[#allocation8 + $0x398] sm:$0xff] }
 0x113   :  { %1742 = vmatprep.subr.bf16.mxu0 %v2800_v50  ;;  %v895_v50 = vld [vmem:[#allocation8 + $0x2b0] sm:$0xff] }
 0x116   :  { %1743 = vmatpush1.bf16.msra.mxu0 %v2798_v11  ;;  %v893_v11 = vld [vmem:[#allocation8 + $0x2a0] sm:$0xff] }
 0x117   :  { %1744 = vmatprep.subr.bf16.mxu0 %v2803_v2  ;;  %v900_v2 = vld [vmem:[#allocation8 + $0x2d8] sm:$0xff] }
 0x11a   :  { %1745 = vmatpush1.bf16.msra.mxu0 %v2801_v0  ;;  %v898_v0 = vld [vmem:[#allocation8 + $0x2c8] sm:$0xff] }
 0x11b   :  { %1746 = vmatprep.subr.bf16.mxu0 %v2806_v4  ;;  %v3264_v4 = vpack.c.bf16 %v900_v2, %v898_v0 }
 0x11e   :  { %1747 = vmatpush1.bf16.msra.mxu0 %v2804_v53  ;;  %v3262_v53 = vpack.c.bf16 %v895_v50, %v893_v11  ;;  %v3300_v11 = vld [vmem:[#allocation3] sm:$0xff] }
 0x11f   :  { %1748 = vmatprep.subr.bf16.mxu0 %v2809_v55  ;;  %v899_v55 = vld [vmem:[#allocation8 + $0x2d0] sm:$0xff] }
 0x122   :  { %1749 = vmatpush1.bf16.msra.mxu0 %v2807_v6  ;;  %v897_v6 = vld [vmem:[#allocation8 + $0x2c0] sm:$0xff] }
 0x123   :  { %1750 = vmatprep.subr.bf16.mxu0 %v2812_v10  ;;  %v904_v10 = vld [vmem:[#allocation8 + $0x2f8] sm:$0xff] }
 0x126   :  { %1751 = vmatpush1.bf16.msra.mxu0 %v2810_v8  ;;  %v902_v8 = vld [vmem:[#allocation8 + $0x2e8] sm:$0xff] }
 0x127   :  { %1752 = vmatprep.subr.bf16.mxu0 %v2815_v20  ;;  %v903_v20 = vld [vmem:[#allocation8 + $0x2f0] sm:$0xff] }
 0x12a   :  { %1753 = vmatpush1.bf16.msra.mxu0 %v2813_v18  ;;  %v901_v18 = vld [vmem:[#allocation8 + $0x2e0] sm:$0xff] }
 0x12b   :  { %1754 = vmatprep.subr.bf16.mxu0 %v2818_v3 }
 0x12e   :  { %1755 = vmatpush1.bf16.msra.mxu0 %v2816_v17  ;;  %v3274_v17 = vpack.c.bf16 %v903_v20, %v901_v18 }
 0x12f   :  { %1756 = vmatprep.subr.bf16.mxu0 %v2821_v21  ;;  %v907_v21 = vld [vmem:[#allocation8 + $0x310] sm:$0xff] }
 0x132   :  { %1757 = vmatpush1.bf16.msra.mxu0 %v2819_v19  ;;  %v905_v19 = vld [vmem:[#allocation8 + $0x300] sm:$0xff] }
 0x133   :  { %1758 = vmatprep.subr.bf16.mxu0 %v2824_v25  ;;  %v912_v25 = vld [vmem:[#allocation8 + $0x338] sm:$0xff]  ;;  %v3280_v27 = vpack.c.bf16 %v907_v21, %v905_v19 }
 0x136   :  { %1759 = vmatpush1.bf16.msra.mxu0 %v2822_v23  ;;  %v910_v23 = vld [vmem:[#allocation8 + $0x328] sm:$0xff] }
 0x137   :  { %2550 = vmatprep.subr.bf16.mxu0 %v3198_v36  ;;  %v888_v36 = vld [vmem:[#allocation8 + $0x278] sm:$0xff]  ;;  %v3282_v26 = vpack.c.bf16 %v912_v25, %v910_v23 }
 0x138   :  { %v3246_v38 = vpack.c.bf16 %v888_v36, %v886_v46  ;;  %v918_v46 = vld [vmem:[#allocation8 + $0x368] sm:$0xff]  ;;  %v920_v36 = vld [vmem:[#allocation8 + $0x378] sm:$0xff] }
 0x139   :  { %1761 = vmatmul.mubr.bf16.vlgmr.msra.gmra.mrb[12].mxu0 %v3206_v52  ;;  %v3294_v40 = vpack.c.bf16 %v920_v36, %v918_v46 }
 0x13a   :  { %2552 = vmatpush1.bf16.msra.mxu0 %v3231_v28 }
 0x13b   :  { %2554 = vmatprep.subr.bf16.mxu0 %v3233_v33 }
 0x13e   :  { %2556 = vmatpush1.bf16.msra.mxu0 %v3238_v32 }
 0x13f   :  { %2558 = vmatprep.subr.bf16.mxu0 %v3240_v41 }
 0x142   :  { %2560 = vmatpush1.bf16.msra.mxu0 %v3244_v51 }
 0x143   :  { %2562 = vmatprep.subr.bf16.mxu0 %v3246_v38 }
 0x146   :  { %2564 = vmatpush1.bf16.msra.mxu0 %v3250_v42 }
 0x147   :  { %2566 = vmatprep.subr.bf16.mxu0 %v3252_v60 }
 0x14a   :  { %2568 = vmatpush1.bf16.msra.mxu0 %v3256_v47 }
 0x14b   :  { %2570 = vmatprep.subr.bf16.mxu0 %v3258_v7 }
 0x14c   :  { %v3210_v57 = vpop.f32.mrb[0].mxu0 }
 0x14d   :  { %v3212_v9 = vpop.f32.mrb[0].mxu1  ;;  %v3220_v13 = vpop.f32.mrb[1].mxu0 }
 0x14e   :  { %v766_v12 = vmax.f32 %v3210_v57, %v3212_v9  ;;  %v3218_v59 = vadd.f32 %v3212_v9, %v3210_v57  ;;  %v3222_v14 = vpop.f32.mrb[1].mxu1  ;;  %v681_v16 = vpop.f32.mrb[2].mxu0  ;;  %2572 = vmatpush1.bf16.msra.mxu0 %v3262_v53  ;;  %v925_v57 = vld [vmem:[#allocation8 + $0x3a0] sm:$0xff]  ;;  %v927_v9 = vld [vmem:[#allocation8 + $0x3b0] sm:$0xff] }
 0x14f   :  { %v767_v61 = vmax.f32 %v3220_v13, %v3222_v14  ;;  %v3228_v15 = vadd.f32 %v3222_v14, %v3220_v13  ;;  %v722_v63 = vpop.f32.mrb[2].mxu1  ;;  %v682_v22 = vpop.f32.mrb[3].mxu0  ;;  %2574 = vmatprep.subr.bf16.mxu0 %v3264_v4  ;;  %v3268_v16 = vpack.c.bf16 %v899_v55, %v897_v6  ;;  %v3304_v6 = vpack.c.bf16 %v924_v44, %v922_v62  ;;  %v921_v55 = vld [vmem:[#allocation8 + $0x380] sm:$0xff]  ;;  %v931_v62 = vld [vmem:[#allocation8 + $0x3d0] sm:$0xff] }
 0x150   :  { %v723_v24 = vpop.f32.mrb[3].mxu1  ;;  %v3270_v63 = vpack.c.bf16 %v904_v10, %v902_v8  ;;  %v906_v22 = vld [vmem:[#allocation8 + $0x308] sm:$0xff]  ;;  %v923_v8 = vld [vmem:[#allocation8 + $0x390] sm:$0xff] }
 0x151   :  { %v908_v24 = vld [vmem:[#allocation8 + $0x318] sm:$0xff]  ;;  %v3320_v29 = vpack.c.bf16 %v923_v8, %v921_v55  ;;  %v2479_v8 = vpack.c.bf16 %v931_v62, %v929_v58  ;;  %v2869_v62 = vld [vmem:[#allocation6 + $0x2b4] ss:$24 sps:$4 sm:$0xff]  }
 0x152   :  { %2576 = vmatpush1.bf16.msra.mxu0 %v3268_v16  ;;  %v3276_v3 = vpack.c.bf16 %v908_v24, %v906_v22  ;;  %v926_v22 = vld [vmem:[#allocation8 + $0x3a8] sm:$0xff]  ;;  %v928_v24 = vld [vmem:[#allocation8 + $0x3b8] sm:$0xff] }
 0x153   :  { %2578 = vmatprep.subr.bf16.mxu0 %v3270_v63  ;;  %v3323_v35 = vpack.c.bf16 %v928_v24, %v926_v22  ;;  %v933_v22 = vld [vmem:[#allocation8 + $0x3e0] sm:$0xff]  ;;  %v935_v24 = vld [vmem:[#allocation8 + $0x3f0] sm:$0xff] }
 0x154   :  { %v2864_v58 = vld [vmem:[#allocation6 + $0x280] ss:$24 sps:$4 sm:$0xff]  }
 0x156   :  { %2580 = vmatpush1.bf16.msra.mxu0 %v3274_v17 }
 0x157   :  { %2582 = vmatprep.subr.bf16.mxu0 %v3276_v3 }
 0x15a   :  { %2584 = vmatpush1.bf16.msra.mxu0 %v3280_v27 }
 0x15b   :  { %2586 = vmatprep.subr.bf16.mxu0 %v3282_v26 }
 0x15e   :  { %2588 = vmatpush1.bf16.msra.mxu0 %v3286_v37 }
 0x15f   :  { %2590 = vmatprep.subr.bf16.mxu0 %v3288_v39 }
 0x162   :  { %2592 = vmatpush1.bf16.msra.mxu0 %v3292_v54 }
 0x163   :  { %2594 = vmatprep.subr.bf16.mxu0 %v3294_v40 }
 0x166   :  { %2596 = vmatpush1.bf16.msra.mxu0 %v3298_v5 }
 0x167   :  { %2598 = vmatprep.subr.bf16.mxu0 %v3304_v6 }
 0x16a   :  { %2600 = vmatpush1.bf16.msra.mxu0 %v3320_v29 }
 0x16b   :  { %2602 = vmatprep.subr.bf16.mxu0 %v3323_v35 }
 0x18c   :  { %v759_v1 = vpop.f32.mrb[4].mxu0 }
 0x18d   :  { %v768_v50 = vmax.f32 %v759_v1, %v3300_v11  ;;  %v774_v0 = vadd.f32 %v3300_v11, %v759_v1  ;;  %v761_v2 = vpop.f32.mrb[5].mxu0  ;;  %v934_v1 = vld [vmem:[#allocation8 + $0x3e8] sm:$0xff] }
 0x18e   :  { %v769_v10 = vmax.f32 %v761_v2, %v3128_v48  ;;  %v775_v18 = vadd.f32 %v761_v2, %v3128_v48  ;;  %v763_v20 = vpop.f32.mrb[6].mxu0 }
 0x18f   :  { %v770_v19 = vmax.f32 %v766_v12, %v768_v50  ;;  %v3313_v21 = vadd.f32 %v774_v0, %v3218_v59  ;;  %v764_v23 = vpop.f32.mrb[7].mxu0  ;;  %v936_v50 = vld [vmem:[#allocation8 + $0x3f8] sm:$0xff] }
 0x190   :  { %v771_v25 = vmax.f32 %v767_v61, %v769_v10  ;;  %v777_v48 = vadd.f32 %v775_v18, %v3228_v15  ;;  %v3329_v15 = vpack.c.bf16 %v927_v9, %v925_v57  ;;  %v2481_v20 = vpack.c.bf16 %v936_v50, %v934_v1  ;;  %v2872_v1 = vld [vmem:[#allocation6 + $0x2e4] ss:$24 sps:$4 sm:$0xff]   ;;  %v2870_v50 = vld [vmem:[#allocation6 + $0x2e0] ss:$24 sps:$4 sm:$0xff]  }
 0x191   :  { %v779_v31 = vsel %vm778_vm0, %v770_v19, -inf }
 0x192   :  { %v780_v12 = vrot.slane %v779_v31, 4  ;;  %v786_v59 = vsel %vm778_vm0, %v771_v25, -inf  ;;  %v800_v30 = vsel %vm778_vm0, %v777_v48, 0.0  ;;  %2604 = vmatpush1.bf16.msra.mxu0 %v3329_v15  ;;  %v2483_v48 = vpack.c.bf16 %v935_v24, %v933_v22  ;;  %v1853_v22 = vld [vmem:[#allocation8 + $0x8] sm:$0xff]  ;;  %v1855_v24 = vld [vmem:[#allocation8 + $0x18] sm:$0xff] }
 0x193   :  { %v787_v13 = vrot.slane %v786_v59, 4  ;;  %v801_v14 = vrot.slane %v800_v30, 4  ;;  %2606 = vmatprep.subr.bf16.mxu0 %v2477_v56 }
 0x194   :  { %v781_v61 = vmax.f32 %v779_v31, %v780_v12 }
 0x195   :  { %v788_v46 = vmax.f32 %v786_v59, %v787_v13  ;;  %v802_v36 = vadd.f32 %v801_v14, %v800_v30  ;;  %v2851_v59 = vld [vmem:[#allocation6 + $0x194] ss:$24 sps:$4 sm:$0xff]   ;;  %v2849_v30 = vld [vmem:[#allocation6 + $0x190] ss:$24 sps:$4 sm:$0xff]  }
 0x196   :  { %v782_v44 = vrot.slane %v781_v61, 2  ;;  %2608 = vmatpush1.bf16.msra.mxu0 %v2479_v8  ;;  %v2857_v13 = vld [vmem:[#allocation6 + $0x1f4] ss:$24 sps:$4 sm:$0xff]   ;;  %v2855_v14 = vld [vmem:[#allocation6 + $0x1f0] ss:$24 sps:$4 sm:$0xff]  }
 0x197   :  { %v789_v0 = vrot.slane %v788_v46, 2  ;;  %v803_v2 = vrot.slane %v802_v36, 2  ;;  %2610 = vmatprep.subr.bf16.mxu0 %v2481_v20 }
 0x198   :  { %v783_v55 = vmax.f32 %v781_v61, %v782_v44  ;;  %v2860_v61 = vld [vmem:[#allocation6 + $0x224] ss:$24 sps:$4 sm:$0xff]   ;;  %v2867_v44 = vld [vmem:[#allocation6 + $0x2b0] ss:$24 sps:$4 sm:$0xff]  }
 0x199   :  { %v790_v10 = vmax.f32 %v788_v46, %v789_v0  ;;  %v804_v18 = vadd.f32 %v803_v2, %v802_v36  ;;  %v2863_v46 = vld [vmem:[#allocation6 + $0x254] ss:$24 sps:$4 sm:$0xff]   ;;  %v2861_v36 = vld [vmem:[#allocation6 + $0x250] ss:$24 sps:$4 sm:$0xff]  }
 0x19a   :  { %v784_v19 = vrot.slane %v783_v55, 1  ;;  %2612 = vmatpush1.bf16.msra.mxu0 %v2483_v48 }
 0x19b   :  { %v791_v23 = vrot.slane %v790_v10, 1  ;;  %v805_v25 = vrot.slane %v804_v18, 1 }
 0x19c   :  { %v785_v9 = vmax.f32 %v783_v55, %v784_v19  ;;  %v2485_v19 = vpack.c.bf16 %v1855_v24, %v1853_v22  ;;  %v1891_v22 = vld [vmem:[#allocation8 + $0x138] sm:$0xff] }
 0x19d   :  { %v792_v31 = vmax.f32 %v790_v10, %v791_v23  ;;  %v806_v57 = vadd.f32 %v805_v25, %v804_v18  ;;  %v1852_v23 = vld [vmem:[#allocation8] sm:$0xff]  ;;  %v1854_v25 = vld [vmem:[#allocation8 + $0x10] sm:$0xff] }
 0x19f   :  { %1002 = vmatprep.mubr.f32.mxu1 %v792_v31  ;;  %v808_v12 = vmul.f32 0.0625, %v806_v57  ;;  %v1857_v31 = vld [vmem:[#allocation8 + $0x28] sm:$0xff]  ;;  %v1859_v57 = vld [vmem:[#allocation8 + $0x38] sm:$0xff] }
 0x1a0   :  { %1003 = vmatmul.mubr.f32.vlgmr.msra.gmra.mrb[4].mxu1 %v785_v9  ;;  %v1856_v9 = vld [vmem:[#allocation8 + $0x20] sm:$0xff] }
 0x1a1   :  { %2424 = vmatpush1.bf16.msra.mxu1 %v3231_v28  ;;  %1073 = vmatprep.mubr.f32.mxu1 %v808_v12  ;;  %v793_v28 = vsel %vm778_vm0, %v3313_v21, 0.0  ;;  %v2489_v12 = vpack.c.bf16 %v1859_v57, %v1857_v31  ;;  %v1895_v31 = vld [vmem:[#allocation8 + $0x158] sm:$0xff] }
 0x1a2   :  { %2426 = vmatprep.subr.bf16.mxu1 %v3233_v33  ;;  %v794_v33 = vrot.slane %v793_v28, 4 }
 0x1a5   :  { %2428 = vmatpush1.bf16.msra.mxu1 %v3238_v32  ;;  %v795_v32 = vadd.f32 %v794_v33, %v793_v28  ;;  %v1858_v28 = vld [vmem:[#allocation8 + $0x30] sm:$0xff]  ;;  %v1861_v33 = vld [vmem:[#allocation8 + $0x48] sm:$0xff] }
 0x1a6   :  { %2430 = vmatprep.subr.bf16.mxu1 %v3240_v41 }
 0x1a7   :  { %v796_v41 = vrot.slane %v795_v32, 2 }
 0x1a9   :  { %2432 = vmatpush1.bf16.msra.mxu1 %v3244_v51  ;;  %v797_v51 = vadd.f32 %v796_v41, %v795_v32  ;;  %v1863_v32 = vld [vmem:[#allocation8 + $0x58] sm:$0xff]  ;;  %v2491_v41 = vpack.c.bf16 %v1858_v28, %v1856_v9  ;;  %v1894_v28 = vld [vmem:[#allocation8 + $0x150] sm:$0xff] }
 0x1aa   :  { %2434 = vmatprep.subr.bf16.mxu1 %v3246_v38 }
 0x1ab   :  { %v798_v38 = vrot.slane %v797_v51, 1 }
 0x1ad   :  { %2436 = vmatpush1.bf16.msra.mxu1 %v3250_v42  ;;  %v799_v42 = vadd.f32 %v798_v38, %v797_v51  ;;  %v2493_v51 = vpack.c.bf16 %v1863_v32, %v1861_v33  ;;  %v1860_v38 = vld [vmem:[#allocation8 + $0x40] sm:$0xff]  ;;  %v1897_v32 = vld [vmem:[#allocation8 + $0x168] sm:$0xff] }
 0x1ae   :  { %2438 = vmatprep.subr.bf16.mxu1 %v3252_v60  ;;  %v2827_v60 = vld [vmem:[#allocation6 + $0x14] ss:$24 sps:$4 sm:$0xff]  }
 0x1b1   :  { %2440 = vmatpush1.bf16.msra.mxu1 %v3256_v47  ;;  %v2825_v47 = vld [vmem:[#allocation6 + $0x10] ss:$24 sps:$4 sm:$0xff]  }
 0x1b2   :  { %2442 = vmatprep.subr.bf16.mxu1 %v3258_v7  ;;  %v807_v7 = vmul.f32 0.0625, %v799_v42  ;;  %v1862_v42 = vld [vmem:[#allocation8 + $0x50] sm:$0xff] }
 0x1b5   :  { %2444 = vmatpush1.bf16.msra.mxu1 %v3262_v53  ;;  %v2830_v53 = vld [vmem:[#allocation6 + $0x44] ss:$24 sps:$4 sm:$0xff]  }
 0x1b6   :  { %2446 = vmatprep.subr.bf16.mxu1 %v3264_v4  ;;  %v2828_v4 = vld [vmem:[#allocation6 + $0x40] ss:$24 sps:$4 sm:$0xff]  }
 0x1b9   :  { %2448 = vmatpush1.bf16.msra.mxu1 %v3268_v16  ;;  %v2833_v16 = vld [vmem:[#allocation6 + $0x74] ss:$24 sps:$4 sm:$0xff]  }
 0x1ba   :  { %2450 = vmatprep.subr.bf16.mxu1 %v3270_v63  ;;  %v2831_v63 = vld [vmem:[#allocation6 + $0x70] ss:$24 sps:$4 sm:$0xff]  }
 0x1bd   :  { %2452 = vmatpush1.bf16.msra.mxu1 %v3274_v17  ;;  %v2836_v17 = vld [vmem:[#allocation6 + $0xa4] ss:$24 sps:$4 sm:$0xff]  }
 0x1be   :  { %2454 = vmatprep.subr.bf16.mxu1 %v3276_v3  ;;  %v2834_v3 = vld [vmem:[#allocation6 + $0xa0] ss:$24 sps:$4 sm:$0xff]  }
 0x1c1   :  { %2456 = vmatpush1.bf16.msra.mxu1 %v3280_v27  ;;  %v2839_v27 = vld [vmem:[#allocation6 + $0xd4] ss:$24 sps:$4 sm:$0xff]  }
 0x1c2   :  { %2458 = vmatprep.subr.bf16.mxu1 %v3282_v26  ;;  %v2837_v26 = vld [vmem:[#allocation6 + $0xd0] ss:$24 sps:$4 sm:$0xff]  }
 0x1c5   :  { %2460 = vmatpush1.bf16.msra.mxu1 %v3286_v37  ;;  %v2842_v37 = vld [vmem:[#allocation6 + $0x104] ss:$24 sps:$4 sm:$0xff]  }
 0x1c6   :  { %2462 = vmatprep.subr.bf16.mxu1 %v3288_v39  ;;  %v2840_v39 = vld [vmem:[#allocation6 + $0x100] ss:$24 sps:$4 sm:$0xff]  }
 0x1c9   :  { %2464 = vmatpush1.bf16.msra.mxu1 %v3292_v54  ;;  %v2845_v54 = vld [vmem:[#allocation6 + $0x134] ss:$24 sps:$4 sm:$0xff]  }
 0x1ca   :  { %2466 = vmatprep.subr.bf16.mxu1 %v3294_v40 }
 0x1cc   :  { %v3362_v40 = vpop.f32.mrb[8].mxu0 }
 0x1cd   :  { %2468 = vmatpush1.bf16.msra.mxu1 %v3298_v5  ;;  %v3364_v5 = vpop.f32.mrb[9].mxu0 }
 0x1ce   :  { %2470 = vmatprep.subr.bf16.mxu1 %v3304_v6  ;;  %v2848_v6 = vld [vmem:[#allocation6 + $0x164] ss:$24 sps:$4 sm:$0xff]   ;;  %v1725_v21 = vpop.f32.mrb[10].mxu0 }
 0x1cf   :  { %v1872_v21 = vld [vmem:[#allocation8 + $0xa0] sm:$0xff] }
 0x1d1   :  { %2472 = vmatpush1.bf16.msra.mxu1 %v3320_v29  ;;  %v1726_v29 = vpop.f32.mrb[11].mxu0 }
 0x1d2   :  { %2474 = vmatprep.subr.bf16.mxu1 %v3323_v35  ;;  %v2846_v35 = vld [vmem:[#allocation6 + $0x160] ss:$24 sps:$4 sm:$0xff]   ;;  %v1874_v29 = vld [vmem:[#allocation8 + $0xb0] sm:$0xff] }
 0x1d5   :  { %2476 = vmatpush1.bf16.msra.mxu1 %v3329_v15  ;;  %v2858_v15 = vld [vmem:[#allocation6 + $0x220] ss:$24 sps:$4 sm:$0xff]  }
 0x1d6   :  { %2478 = vmatprep.subr.bf16.mxu1 %v2477_v56  ;;  %v2866_v56 = vld [vmem:[#allocation6 + $0x284] ss:$24 sps:$4 sm:$0xff]  }
 0x1d9   :  { %2480 = vmatpush1.bf16.msra.mxu1 %v2479_v8 }
 0x1da   :  { %2482 = vmatprep.subr.bf16.mxu1 %v2481_v20 }
 0x1dd   :  { %2484 = vmatpush1.bf16.msra.mxu1 %v2483_v48  ;;  %v2487_v48 = vpack.c.bf16 %v1854_v25, %v1852_v23  ;;  %v1888_v23 = vld [vmem:[#allocation8 + $0x120] sm:$0xff]  ;;  %v1890_v25 = vld [vmem:[#allocation8 + $0x130] sm:$0xff] }
 0x1de   :  { %1769 = vmatprep.subr.bf16.mxu1 %v2827_v60  ;;  %v1865_v60 = vld [vmem:[#allocation8 + $0x68] sm:$0xff]  ;;  %v2523_v57 = vpack.c.bf16 %v1890_v25, %v1888_v23 }
 0x1e0   :  { %1074 = vmatmul.mubr.f32.vlgmr.msra.gmra.mrb[4].mxu1 %v807_v7  ;;  %v2495_v7 = vpack.c.bf16 %v1862_v42, %v1860_v38  ;;  %v1896_v38 = vld [vmem:[#allocation8 + $0x160] sm:$0xff]  ;;  %v1898_v42 = vld [vmem:[#allocation8 + $0x170] sm:$0xff] }
 0x1e1   :  { %1770 = vmatpush1.bf16.msra.mxu1 %v2825_v47  ;;  %1801 = vmatprep.mubr.bf16.mxu1 %v3202_v49  ;;  %v2843_v49 = vld [vmem:[#allocation6 + $0x130] ss:$24 sps:$4 sm:$0xff]   ;;  %v1867_v47 = vld [vmem:[#allocation8 + $0x78] sm:$0xff] }
 0x1e2   :  { %1771 = vmatprep.subr.bf16.mxu1 %v2830_v53  ;;  %v2497_v53 = vpack.c.bf16 %v1867_v47, %v1865_v60  ;;  %v2531_v60 = vpack.c.bf16 %v1898_v42, %v1896_v38  ;;  %v1901_v47 = vld [vmem:[#allocation8 + $0x188] sm:$0xff] }
 0x1e5   :  { %1772 = vmatpush1.bf16.msra.mxu1 %v2828_v4  ;;  %v1864_v4 = vld [vmem:[#allocation8 + $0x60] sm:$0xff] }
 0x1e6   :  { %1773 = vmatprep.subr.bf16.mxu1 %v2833_v16  ;;  %v1866_v16 = vld [vmem:[#allocation8 + $0x70] sm:$0xff] }
 0x1e9   :  { %1774 = vmatpush1.bf16.msra.mxu1 %v2831_v63  ;;  %v1869_v63 = vld [vmem:[#allocation8 + $0x88] sm:$0xff] }
 0x1ea   :  { %1775 = vmatprep.subr.bf16.mxu1 %v2836_v17  ;;  %v1871_v17 = vld [vmem:[#allocation8 + $0x98] sm:$0xff] }
 0x1ed   :  { %1776 = vmatpush1.bf16.msra.mxu1 %v2834_v3  ;;  %v2499_v3 = vpack.c.bf16 %v1866_v16, %v1864_v4  ;;  %v1900_v4 = vld [vmem:[#allocation8 + $0x180] sm:$0xff]  ;;  %v1902_v16 = vld [vmem:[#allocation8 + $0x190] sm:$0xff] }
 0x1ee   :  { %1777 = vmatprep.subr.bf16.mxu1 %v2839_v27  ;;  %v2501_v27 = vpack.c.bf16 %v1871_v17, %v1869_v63  ;;  %v2535_v63 = vpack.c.bf16 %v1902_v16, %v1900_v4  ;;  %v1905_v17 = vld [vmem:[#allocation8 + $0x1a8] sm:$0xff] }
 0x1f1   :  { %1778 = vmatpush1.bf16.msra.mxu1 %v2837_v26  ;;  %v1868_v26 = vld [vmem:[#allocation8 + $0x80] sm:$0xff] }
 0x1f2   :  { %1779 = vmatprep.subr.bf16.mxu1 %v2842_v37  ;;  %v1870_v37 = vld [vmem:[#allocation8 + $0x90] sm:$0xff] }
 0x1f5   :  { %1780 = vmatpush1.bf16.msra.mxu1 %v2840_v39  ;;  %v1873_v39 = vld [vmem:[#allocation8 + $0xa8] sm:$0xff] }
 0x1f6   :  { %1781 = vmatprep.subr.bf16.mxu1 %v2845_v54  ;;  %v1875_v54 = vld [vmem:[#allocation8 + $0xb8] sm:$0xff] }
 0x1f9   :  { %1782 = vmatpush1.bf16.msra.mxu1 %v2843_v49  ;;  %v2503_v49 = vpack.c.bf16 %v1870_v37, %v1868_v26  ;;  %v1904_v26 = vld [vmem:[#allocation8 + $0x1a0] sm:$0xff]  ;;  %v1906_v37 = vld [vmem:[#allocation8 + $0x1b0] sm:$0xff] }
 0x1fa   :  { %1783 = vmatprep.subr.bf16.mxu1 %v2848_v6  ;;  %v2505_v6 = vpack.c.bf16 %v1875_v54, %v1873_v39  ;;  %v2539_v39 = vpack.c.bf16 %v1906_v37, %v1904_v26  ;;  %v1909_v54 = vld [vmem:[#allocation8 + $0x1c8] sm:$0xff] }
 0x1fd   :  { %1784 = vmatpush1.bf16.msra.mxu1 %v2846_v35  ;;  %v1877_v35 = vld [vmem:[#allocation8 + $0xc8] sm:$0xff] }
 0x1fe   :  { %1785 = vmatprep.subr.bf16.mxu1 %v2851_v59  ;;  %v1879_v59 = vld [vmem:[#allocation8 + $0xd8] sm:$0xff] }
 0x201   :  { %1786 = vmatpush1.bf16.msra.mxu1 %v2849_v30  ;;  %v2507_v30 = vpack.c.bf16 %v1874_v29, %v1872_v21  ;;  %v1908_v21 = vld [vmem:[#allocation8 + $0x1c0] sm:$0xff]  ;;  %v1910_v29 = vld [vmem:[#allocation8 + $0x1d0] sm:$0xff] }
 0x202   :  { %1787 = vmatprep.subr.bf16.mxu1 %v2854_v43  ;;  %v2509_v43 = vpack.c.bf16 %v1879_v59, %v1877_v35  ;;  %v2543_v35 = vpack.c.bf16 %v1910_v29, %v1908_v21  ;;  %v1913_v59 = vld [vmem:[#allocation8 + $0x1e8] sm:$0xff] }
 0x205   :  { %1788 = vmatpush1.bf16.msra.mxu1 %v2852_v45  ;;  %v1876_v45 = vld [vmem:[#allocation8 + $0xc0] sm:$0xff] }
 0x206   :  { %1789 = vmatprep.subr.bf16.mxu1 %v2857_v13  ;;  %v1878_v13 = vld [vmem:[#allocation8 + $0xd0] sm:$0xff] }
 0x209   :  { %1790 = vmatpush1.bf16.msra.mxu1 %v2855_v14  ;;  %v1881_v14 = vld [vmem:[#allocation8 + $0xe8] sm:$0xff] }
 0x20a   :  { %1791 = vmatprep.subr.bf16.mxu1 %v2860_v61  ;;  %v1883_v61 = vld [vmem:[#allocation8 + $0xf8] sm:$0xff] }
 0x20c   :  { %v3367_v0 = vpop.f32.mrb[12].mxu0 }
 0x20d   :  { %1792 = vmatpush1.bf16.msra.mxu1 %v2858_v15  ;;  %v1810_v2 = vmax.f32 %v3362_v40, %v3367_v0  ;;  %v3373_v55 = vadd.f32 %v3367_v0, %v3362_v40  ;;  %v3375_v8 = vpop.f32.mrb[13].mxu0  ;;  %v2511_v15 = vpack.c.bf16 %v1878_v13, %v1876_v45  ;;  %v1914_v13 = vld [vmem:[#allocation8 + $0x1f0] sm:$0xff] }
 0x20e   :  { %1793 = vmatprep.subr.bf16.mxu1 %v2863_v46  ;;  %v1811_v10 = vmax.f32 %v3364_v5, %v3375_v8  ;;  %v3381_v18 = vadd.f32 %v3375_v8, %v3364_v5  ;;  %v1766_v20 = vpop.f32.mrb[14].mxu0  ;;  %v2513_v46 = vpack.c.bf16 %v1883_v61, %v1881_v14  ;;  %v3386_v61 = vstv %s3436_s3  ;;  %s2994_s3 = smov [#allocation9]  }
 0x20f   :  { %v1886_v20 = vld [vmem:[#allocation8 + $0x110] sm:$0xff]  ;;  %s2152_s30 = sshll.u32 %s2994_s3, 4  ;;  %s2153_s30 = int_to_ptr.vmem [resolvable:$true] %s2152_s30 }
 0x210   :  { %s2957_s5 = scalar_lea.vmem %s2153_s30, 256  ;;  %p2962_p11 = scmp.lt.s32.totalorder %s2153_s30, %s2153_s30 }
 0x211   :  { %1794 = vmatpush1.bf16.msra.mxu1 %v2861_v36  ;;  %v1880_v36 = vld [vmem:[#allocation8 + $0xe0] sm:$0xff]  ;;  %p2958_p10 = scmp.ne.s32.totalorder %s2153_s30, %s2957_s5  ;;  %p2963_p12 = scmp.lt.s32.totalorder %s2957_s5, %s2957_s5 }
 0x212   :  { %1795 = vmatprep.subr.bf16.mxu1 %v2866_v56  ;;  %v1882_v56 = vld [vmem:[#allocation8 + $0xf0] sm:$0xff] }
 0x213   :  { %p2964_p13 = por %p2963_p12, %p2962_p11 }
 0x215   :  { %1796 = vmatpush1.bf16.msra.mxu1 %v2864_v58  ;;  %v1885_v58 = vld [vmem:[#allocation8 + $0x108] sm:$0xff]  ;;  %p2965_p0 = pnand %p2964_p13, %p2958_p10 }
 0x216   :  { %1797 = vmatprep.subr.bf16.mxu1 %v2869_v62  ;;  %v1887_v62 = vld [vmem:[#allocation8 + $0x118] sm:$0xff] }
 0x219   :  { %1798 = vmatpush1.bf16.msra.mxu1 %v2867_v44  ;;  %v2515_v44 = vpack.c.bf16 %v1882_v56, %v1880_v36 }
 0x21a   :  { %1799 = vmatprep.subr.bf16.mxu1 %v2872_v1  ;;  %v2517_v1 = vpack.c.bf16 %v1887_v62, %v1885_v58 }
 0x21d   :  { %1800 = vmatpush1.bf16.msra.mxu1 %v2870_v50  ;;  %v1884_v50 = vld [vmem:[#allocation8 + $0x100] sm:$0xff] }
 0x21e   :  { %2486 = vmatprep.subr.bf16.mxu1 %v2485_v19  ;;  %v2519_v24 = vpack.c.bf16 %v1886_v20, %v1884_v50 }
 0x220   :  { %1802 = vmatmul.mubr.bf16.vlgmr.msra.gmra.mrb[8].mxu1 %v3206_v52  ;;  %v1767_v52 = vpop.f32.mrb[15].mxu0 }
 0x221   :  { %2488 = vmatpush1.bf16.msra.mxu1 %v2487_v48  ;;  %v1889_v52 = vld [vmem:[#allocation8 + $0x128] sm:$0xff] }
 0x222   :  { %2490 = vmatprep.subr.bf16.mxu1 %v2489_v12  ;;  %v2521_v19 = vpack.c.bf16 %v1891_v22, %v1889_v52  ;;  %v1893_v48 = vld [vmem:[#allocation8 + $0x148] sm:$0xff]  ;;  %v1892_v12 = vld [vmem:[#allocation8 + $0x140] sm:$0xff] }
 0x223   :  { %v2525_v9 = vpack.c.bf16 %v1895_v31, %v1893_v48  ;;  %v2527_v33 = vpack.c.bf16 %v1894_v28, %v1892_v12 }
 0x225   :  { %2492 = vmatpush1.bf16.msra.mxu1 %v2491_v41  ;;  %v1899_v41 = vld [vmem:[#allocation8 + $0x178] sm:$0xff] }
 0x226   :  { %2494 = vmatprep.subr.bf16.mxu1 %v2493_v51  ;;  %v2529_v51 = vpack.c.bf16 %v1899_v41, %v1897_v32 }
 0x229   :  { %2496 = vmatpush1.bf16.msra.mxu1 %v2495_v7  ;;  %v1903_v7 = vld [vmem:[#allocation8 + $0x198] sm:$0xff] }
 0x22a   :  { %2498 = vmatprep.subr.bf16.mxu1 %v2497_v53  ;;  %v2533_v53 = vpack.c.bf16 %v1903_v7, %v1901_v47 }
 0x22d   :  { %2500 = vmatpush1.bf16.msra.mxu1 %v2499_v3  ;;  %v1907_v3 = vld [vmem:[#allocation8 + $0x1b8] sm:$0xff] }
 0x22e   :  { %2502 = vmatprep.subr.bf16.mxu1 %v2501_v27  ;;  %v2537_v27 = vpack.c.bf16 %v1907_v3, %v1905_v17 }
 0x231   :  { %2504 = vmatpush1.bf16.msra.mxu1 %v2503_v49  ;;  %v1911_v49 = vld [vmem:[#allocation8 + $0x1d8] sm:$0xff] }
 0x232   :  { %2506 = vmatprep.subr.bf16.mxu1 %v2505_v6  ;;  %v2541_v6 = vpack.c.bf16 %v1911_v49, %v1909_v54 }
 0x235   :  { %2508 = vmatpush1.bf16.msra.mxu1 %v2507_v30  ;;  %v1915_v30 = vld [vmem:[#allocation8 + $0x1f8] sm:$0xff] }
 0x236   :  { %2510 = vmatprep.subr.bf16.mxu1 %v2509_v43  ;;  %v1912_v43 = vld [vmem:[#allocation8 + $0x1e0] sm:$0xff]  ;;  %v2545_v45 = vpack.c.bf16 %v1915_v30, %v1913_v59 }
 0x237   :  { %v2547_v14 = vpack.c.bf16 %v1914_v13, %v1912_v43 }
 0x239   :  { %2512 = vmatpush1.bf16.msra.mxu1 %v2511_v15 }
 0x23a   :  { %2514 = vmatprep.subr.bf16.mxu1 %v2513_v46 }
 0x23d   :  { %2516 = vmatpush1.bf16.msra.mxu1 %v2515_v44 }
 0x23e   :  { %2518 = vmatprep.subr.bf16.mxu1 %v2517_v1 }
 0x241   :  { %2520 = vmatpush1.bf16.msra.mxu1 %v2519_v24  ;;  %v1090_v24 = vlaneseq }
 0x242   :  { %2522 = vmatprep.subr.bf16.mxu1 %v2521_v19 }
 0x243   :  { %v1091_v19 = vshrl.u32 %v1090_v24, 7 }
 0x245   :  { %2524 = vmatpush1.bf16.msra.mxu1 %v2523_v57  ;;  %v3390_v23 = vsub.s32 0, %v1091_v19 }
 0x246   :  { %2526 = vmatprep.subr.bf16.mxu1 %v2525_v9 }
 0x249   :  { %2528 = vmatpush1.bf16.msra.mxu1 %v2527_v33  ;;  %v3395_v33 = vld [vmem:[#allocation3 + $0x8] sm:$0xff] }
 0x24a   :  { %2530 = vmatprep.subr.bf16.mxu1 %v2529_v51 }
 0x24d   :  { %2532 = vmatpush1.bf16.msra.mxu1 %v2531_v60 }
 0x24e   :  { %2534 = vmatprep.subr.bf16.mxu1 %v2533_v53 }
 0x251   :  { %2536 = vmatpush1.bf16.msra.mxu1 %v2535_v63 }
 0x252   :  { %2538 = vmatprep.subr.bf16.mxu1 %v2537_v27 }
 0x255   :  { %2540 = vmatpush1.bf16.msra.mxu1 %v2539_v39 }
 0x256   :  { %2542 = vmatprep.subr.bf16.mxu1 %v2541_v6 }
 0x259   :  { %2544 = vmatpush1.bf16.msra.mxu1 %v2543_v35 }
 0x25a   :  { %2546 = vmatprep.subr.bf16.mxu1 %v2545_v45 }
 0x25d   :  { %2548 = vmatpush1.bf16.msra.mxu1 %v2547_v14 }
 0x2b3   :  { %v1075_v15 = vpop.f32.mrb[4].mxu1 }
 0x2b4   :  { %v2613_v46 = vadd.f32 %v1075_v15, %v3386_v61  ;;  %v1077_v36 = vpop.f32.mrb[5].mxu1 }
 0x2b5   :  { %v2614_v56 = vadd.f32 %v1077_v36, %v3386_v61 }
 0x2b6   :  { %v1080_v58 = vsub.f32 0.0, %v2613_v46 }
 0x2b7   :  { %v1081_v62 = vsub.f32 0.0, %v2614_v56 }
 0x2b8   :  { %v1082_v44 = vmul.f32 1.442695, %v1080_v58 }
 0x2b9   :  { %v1084_v1 = vmul.f32 1.442695, %v1081_v62 }
 0x2ba   :  { %2873 = vpow2.f32 %v1082_v44 }
 0x2bb   :  { %2875 = vpow2.f32 %v1084_v1 }
 0x2c4   :  { %v2874_v50 = vpop.eup %2873 }
 0x2c5   :  { %v2876_v20 = vpop.eup %2875  ;;  %v1086_v52 = vadd.f32 1.0, %v2874_v50 }
 0x2c6   :  { %v1087_v22 = vadd.f32 1.0, %v2876_v20 }
 0x2c7   :  { %2877 = vrcp.f32 %v1086_v52 }
 0x2c8   :  { %2879 = vrcp.f32 %v1087_v22 }
 0x2d1   :  { %v2878_v25 = vpop.eup %2877 }
 0x2d2   :  { %v2880_v48 = vpop.eup %2879  ;;  %v1093_v31 = vrot.slane %v2878_v25, %v3390_v23 }
 0x2d3   :  { %v1097_v57 = vrot.slane %v2880_v48, %v3390_v23 }
 0x2d5   :  { %v1100_v9 = vcombine.low %v1093_v31, %v1097_v57 }
 0x2d7   :  { %v1102_v12 = vmul.f32 %v3300_v11, %v1100_v9 }
 0x2d9   :  { %1103 = vst [vmem:[#allocation9] sm:$0xff] %v1102_v12 }
 0x2f3   :  { %v1803_v28 = vpop.f32.mrb[8].mxu1 }
 0x2f4   :  { %v1812_v32 = vmax.f32 %v1803_v28, %v3395_v33  ;;  %v1818_v41 = vadd.f32 %v3395_v33, %v1803_v28  ;;  %v1805_v51 = vpop.f32.mrb[9].mxu1 }
 0x2f5   :  { %v1813_v38 = vmax.f32 %v1805_v51, %v3196_v34  ;;  %v1819_v42 = vadd.f32 %v1805_v51, %v3196_v34  ;;  %v1807_v60 = vpop.f32.mrb[10].mxu1 }
 0x2f6   :  { %v1814_v47 = vmax.f32 %v1810_v2, %v1812_v32  ;;  %v1820_v11 = vadd.f32 %v1818_v41, %v3373_v55  ;;  %v1808_v7 = vpop.f32.mrb[11].mxu1 }
 0x2f7   :  { %v1815_v53 = vmax.f32 %v1811_v10, %v1813_v38  ;;  %v1821_v4 = vadd.f32 %v1819_v42, %v3381_v18 }
 0x2f8   :  { %v1822_v16 = vsel %vm778_vm0, %v1814_v47, -inf  ;;  %v1836_v63 = vsel %vm778_vm0, %v1820_v11, 0.0 }
 0x2f9   :  { %v1823_v17 = vrot.slane %v1822_v16, 4  ;;  %v1837_v34 = vrot.slane %v1836_v63, 4  ;;  %v1829_v3 = vsel %vm778_vm0, %v1815_v53, -inf  ;;  %v1843_v40 = vsel %vm778_vm0, %v1821_v4, 0.0 }
 0x2fa   :  { %v1830_v0 = vrot.slane %v1829_v3, 4  ;;  %v1844_v2 = vrot.slane %v1843_v40, 4 }
 0x2fb   :  { %v1824_v55 = vmax.f32 %v1822_v16, %v1823_v17  ;;  %v1838_v27 = vadd.f32 %v1837_v34, %v1836_v63 }
 0x2fc   :  { %v1831_v26 = vmax.f32 %v1829_v3, %v1830_v0  ;;  %v1845_v37 = vadd.f32 %v1844_v2, %v1843_v40 }
 0x2fd   :  { %v1825_v5 = vrot.slane %v1824_v55, 2  ;;  %v1839_v8 = vrot.slane %v1838_v27, 2 }
 0x2fe   :  { %v1832_v10 = vrot.slane %v1831_v26, 2  ;;  %v1846_v18 = vrot.slane %v1845_v37, 2 }
 0x2ff   :  { %v1826_v39 = vmax.f32 %v1824_v55, %v1825_v5  ;;  %v1840_v54 = vadd.f32 %v1839_v8, %v1838_v27 }
 0x300   :  { %v1833_v49 = vmax.f32 %v1831_v26, %v1832_v10  ;;  %v1847_v6 = vadd.f32 %v1846_v18, %v1845_v37 }
 0x301   :  { %v1827_v21 = vrot.slane %v1826_v39, 1  ;;  %v1841_v29 = vrot.slane %v1840_v54, 1 }
 0x302   :  { %v1834_v35 = vrot.slane %v1833_v49, 1  ;;  %v1848_v59 = vrot.slane %v1847_v6, 1 }
 0x303   :  { %v1842_v30 = vadd.f32 %v1841_v29, %v1840_v54  ;;  %v1828_v13 = vmax.f32 %v1826_v39, %v1827_v21 }
 0x304   :  { %v1835_v43 = vmax.f32 %v1833_v49, %v1834_v35  ;;  %v1849_v45 = vadd.f32 %v1848_v59, %v1847_v6 }
 0x305   :  { %v1850_v15 = vmul.f32 0.0625, %v1842_v30 }
 0x306   :  { %2044 = vmatprep.mubr.f32.mxu1 %v1835_v43  ;;  %v1851_v14 = vmul.f32 0.0625, %v1849_v45 }
 0x307   :  { %2045 = vmatmul.mubr.f32.vlgmr.msra.gmra.mrb[6].mxu1 %v1828_v13 }
 0x308   :  { %2115 = vmatprep.mubr.f32.mxu0 %v1851_v14 }
 0x309   :  { %2116 = vmatmul.mubr.f32.vlgmr.msra.gmra.mrb[16].mxu0 %v1850_v15 }
 0x3da   :  { %v2046_v46 = vpop.f32.mrb[6].mxu1 }
 0x3db   :  { %v2047_v36 = vadd.f32 %v2046_v46, %v3386_v61  ;;  %v2048_v56 = vpop.f32.mrb[7].mxu1 }
 0x3dc   :  { %v2049_v58 = vadd.f32 %v2048_v56, %v3386_v61  ;;  %v2117_v62 = vpop.f32.mrb[16].mxu0 }
 0x3dd   :  { %v2118_v44 = vadd.f32 %v2117_v62, %v2047_v36  ;;  %v2119_v1 = vpop.f32.mrb[17].mxu0 }
 0x3de   :  { %v2120_v50 = vadd.f32 %v2119_v1, %v2049_v58 }
 0x3df   :  { %v2122_v20 = vsub.f32 0.0, %v2118_v44 }
 0x3e0   :  { %v2123_v52 = vsub.f32 0.0, %v2120_v50 }
 0x3e1   :  { %v2124_v22 = vmul.f32 1.442695, %v2122_v20 }
 0x3e2   :  { %v2126_v24 = vmul.f32 1.442695, %v2123_v52 }
 0x3e3   :  { %2881 = vpow2.f32 %v2124_v22 }
 0x3e4   :  { %2883 = vpow2.f32 %v2126_v24 }
 0x3ed   :  { %v2882_v19 = vpop.eup %2881 }
 0x3ee   :  { %v2884_v25 = vpop.eup %2883  ;;  %v2128_v48 = vadd.f32 1.0, %v2882_v19 }
 0x3ef   :  { %v2129_v31 = vadd.f32 1.0, %v2884_v25 }
 0x3f0   :  { %2885 = vrcp.f32 %v2128_v48 }
 0x3f1   :  { %2887 = vrcp.f32 %v2129_v31 }
 0x3fa   :  { %v2886_v57 = vpop.eup %2885 }
 0x3fb   :  { %v2888_v9 = vpop.eup %2887  ;;  %v2135_v61 = vrot.slane %v2886_v57, %v3390_v23 }
 0x3fc   :  { %v2139_v12 = vrot.slane %v2888_v9, %v3390_v23 }
 0x3fe   :  { %v2142_v28 = vcombine.low %v2135_v61, %v2139_v12 }
 0x400   :  { %v2144_v32 = vmul.f32 %v3395_v33, %v2142_v28 }
 0x402   :  { %2146 = vst [vmem:[#allocation9 + $0x8] sm:$0xff] %v2144_v32 }
 0x403   :  { %2968 = shalt.err (!%p2965_p0)
}
 0x404   :  { %s2969_s8 = scalar_lea.hbm %s3437_s4, 256 }
 0x405   :  { %p2970_p1 = scmp.ne.s32.totalorder %s3437_s4, %s2969_s8  ;;  %p2973_p2 = scmp.lt.u32.totalorder %s2969_s8, %s3437_s4 }
 0x407   :  { %p2975_p3 = pnand %p2973_p2, %p2970_p1 }
 0x409   :  { %2978 = shalt.err (!%p2975_p3)
}
 0x40a   :  { %2158 = dma.vmem_to_hbm [thread:$0]  %s2153_s30, 256, %s3437_s4, [#allocation5], %s2989_s1, %s2989_s1, %s2990_s13  }
 0x40b   :  { %2983 = dma.done.wait [#allocation5], 256  }
 0x40c   :  { %2984 = vsyncadd [#allocation5], 4294967040 }
 0x40d   :  { %2162 = vsyncpa [#allocation4], 1 }
 0x40e   :  { %2163 = vsyncpa [#allocation7], 1 }
 0x40f   :  { %2164 = vsyncpa [#allocation5], 1 }

</bundles_post_ra>
